<compile_context>
chip_gen: v7x
topology: tpu7x:2x2x1
jax: 0.10.0
libtpu: 0.0.40
codegen_flags: <defaults>
</compile_context>

<pallas_src>
import math
import functools

import jax
import jax.numpy as jnp
from jax.experimental import pallas as pl
from jax.experimental.pallas import tpu as pltpu


# -----------------------------------------------------------------------------
# Fused kernel: qkv -> batched per-(window, head) attention (+rel-pos bias,
# +optional window mask) -> softmax -> PV -> head merge -> projection.
# -----------------------------------------------------------------------------
def _window_attn_kernel(x_ref, relb_ref, wqkv_ref, bqkv_ref, wproj_ref,
                        bproj_ref, *rest, num_heads):
    if len(rest) == 2:
        wmask_ref, o_ref = rest
    else:
        wmask_ref, o_ref = None, rest[0]

    _, BtN, C = x_ref.shape                      # x block: (1, Bt*N, C)
    nH = num_heads
    N = relb_ref.shape[1]
    Bt = BtN // N
    hd = C // nH
    BH = Bt * nH

    # ---- fused qkv projection: one (Bt*N, C) x (C, 3C) MXU matmul ----------
    x2 = x_ref[0].astype(jnp.bfloat16)                               # (Bt*N, C)
    qkv = jnp.dot(x2, wqkv_ref[...],
                  preferred_element_type=jnp.float32) + bqkv_ref[...]
    qkv = qkv.astype(jnp.bfloat16)                                   # cast once

    # ---- heads -> fused (window*head) batch axis ----------------------------
    # (Bt*N, 3C) -> (Bt, N, 3C) -> (Bt, 3C, N): single minor (XLU) transpose;
    # then sublane regrouping (minor dim never changes in a reshape).
    qkvT = jnp.swapaxes(qkv.reshape(Bt, N, 3 * C), -1, -2)           # (Bt, 3C, N)

    def heads(t):                                  # (Bt, C, N) -> (BH, N, hd)
        return jnp.swapaxes(t.reshape(BH, hd, N), -1, -2)

    q = heads(qkvT[:, :C])        # softmax scale already folded into Wq / bq
    k = heads(qkvT[:, C:2 * C])
    v = heads(qkvT[:, 2 * C:])

    # ---- batched attention scores over the fused batch axis -----------------
    s = jnp.einsum('bqd,bkd->bqk', q, k,
                   preferred_element_type=jnp.float32)               # (BH, N, N)

    # relative-position bias (VMEM resident) + optional per-window mask stream
    s = s.reshape(Bt, nH, N, N) + relb_ref[...][None]
    if wmask_ref is not None:
        s = s + wmask_ref[...].astype(jnp.float32).reshape(Bt, 1, N, N)
    s = s.reshape(BH, N, N)

    # ---- numerically stable softmax (f32); divide moved to the EUP ----------
    s = s - jnp.max(s, axis=-1, keepdims=True)
    p = jnp.exp(s)
    p = p * pl.reciprocal(jnp.sum(p, axis=-1, keepdims=True), approx=True)

    # ---- attention output, head merge, output projection --------------------
    o = jnp.einsum('bqk,bkd->bqd', p.astype(jnp.bfloat16), v,
                   preferred_element_type=jnp.float32)               # (BH, N, hd)
    o = jnp.swapaxes(o.astype(jnp.bfloat16), -1, -2)                 # (BH, hd, N)
    o = jnp.swapaxes(o.reshape(Bt, C, N), -1, -2)                    # (Bt, N, C)
    o = o.reshape(Bt * N, C)

    y = jnp.dot(o, wproj_ref[...],
                preferred_element_type=jnp.float32) + bproj_ref[...]
    o_ref[0] = y.astype(o_ref.dtype)


# -----------------------------------------------------------------------------
# Wrapper
# -----------------------------------------------------------------------------
def window_attention_3d_s(x, rpi, params, *, window_size, num_heads,
                          qk_scale=None, mask=None, sp_mask=None,
                          block_windows=None):
    """Forward of WindowAttention3D_S.  x: (B_, N, C), rpi: (N, N) int32."""
    B_, N, C = x.shape
    assert N == window_size[0] * window_size[1] * window_size[2]
    assert C % num_heads == 0
    nH = num_heads
    hd = C // nH
    scale = float(qk_scale) if qk_scale is not None else hd ** (-0.5)
    out_dtype = x.dtype

    # relative-position bias gather (tiny; hoisted/cached by jit around the call)
    table = params["relative_position_bias_table"].astype(jnp.float32)
    relb = jnp.take(table, rpi.reshape(-1), axis=0).reshape(N, N, nH)
    relb = jnp.transpose(relb, (2, 0, 1))                           # (nH, N, N)

    # PyTorch Linear weights are (out, in): transpose for x @ W.  Fold the
    # softmax scale into the q columns of weight and bias (exact), bf16 for MXU.
    wqkv = jnp.transpose(params["qkv_weight"]).astype(jnp.float32)  # (C, 3C)
    bqkv = params["qkv_bias"].astype(jnp.float32)                   # (3C,)
    qcol = jnp.concatenate([jnp.full((C,), scale, jnp.float32),
                            jnp.ones((2 * C,), jnp.float32)])
    wqkv = (wqkv * qcol[None, :]).astype(jnp.bfloat16)
    bqkv = (bqkv * qcol).reshape(1, 3 * C)
    wproj = jnp.transpose(params["proj_weight"]).astype(jnp.bfloat16)  # (C, C)
    bproj = params["proj_bias"].astype(jnp.float32).reshape(1, C)

    # ---- windows per grid step ----------------------------------------------
    if block_windows is None:
        # Target 16-64 windows/step (amortise ~0.35us/step, fill the MXU row
        # dim), keep >= 2 grid steps for the two v7x TensorCores, and cap by a
        # VMEM budget derived from the live intermediates.
        per_window = 4 * (8 * N * C + 6 * nH * N * N)
        vmem_cap = max(1, (24 << 20) // per_window)
        cap = max(1, min(64, B_ // 2 if B_ >= 2 else 1, vmem_cap))
        Bt = 1
        for d in range(cap, 0, -1):
            if B_ % d == 0:
                Bt = d
                break
    else:
        Bt = int(block_windows)
    assert B_ % Bt == 0
    G = B_ // Bt

    # ---- optional per-window additive mask (sp_mask / mask) ------------------
    # Composed separately from the relative-position bias so the big
    # (B_, nH, N, N) bias tensor is never materialised in HBM; streamed as bf16.
    wmask = None
    wm_spec = None
    if sp_mask is not None or mask is not None:
        periods = [m.shape[0] for m in (sp_mask, mask) if m is not None]
        L = periods[0] if len(periods) == 1 else math.lcm(*periods)
        # torch view(B_//nP, nP, ...) semantics: window w adds sp_mask[w % nP]
        # (and mask[w % nW]); requires window-major layout of B_.
        assert B_ % L == 0, "window count must be a multiple of the mask period"
        idx = jnp.arange(L)
        wm = jnp.zeros((L, N, N), jnp.float32)
        if sp_mask is not None:
            wm = wm + sp_mask.astype(jnp.float32)[idx % sp_mask.shape[0]]
        if mask is not None:
            wm = wm + mask.astype(jnp.float32)[idx % mask.shape[0]]
        wm = wm.astype(jnp.bfloat16)
        if Bt % L == 0:
            # mask pattern repeats inside every block: keep it VMEM-resident
            wm = jnp.tile(wm, (Bt // L, 1, 1)).reshape(1, Bt, N, N)
            wm_spec = pl.BlockSpec((1, Bt, N, N), lambda i: (0, 0, 0, 0))
        elif L % Bt == 0:
            nblk = L // Bt
            wm = wm.reshape(nblk, Bt, N, N)
            wm_spec = pl.BlockSpec((1, Bt, N, N), lambda i: (i % nblk, 0, 0, 0))
        else:
            wm = wm[jnp.arange(B_) % L].reshape(G, Bt, N, N)
            wm_spec = pl.BlockSpec((1, Bt, N, N), lambda i: (i, 0, 0, 0))
        wmask = wm

    # Each grid block is a contiguous HBM slab of Bt*N*C elements; the
    # (Bt*N, C) row layout is already the matmul operand layout in the kernel.
    x_in = x.reshape(G, Bt * N, C)

    in_specs = [
        pl.BlockSpec((1, Bt * N, C), lambda i: (i, 0, 0)),
        pl.BlockSpec((nH, N, N), lambda i: (0, 0, 0)),
        pl.BlockSpec((C, 3 * C), lambda i: (0, 0)),
        pl.BlockSpec((1, 3 * C), lambda i: (0, 0)),
        pl.BlockSpec((C, C), lambda i: (0, 0)),
        pl.BlockSpec((1, C), lambda i: (0, 0)),
    ]
    inputs = [x_in, relb, wqkv, bqkv, wproj, bproj]
    if wmask is not None:
        in_specs.append(wm_spec)
        inputs.append(wmask)

    # advisory cost estimate for the XLA scheduler
    flops = (2 * B_ * N * C * 3 * C            # qkv projection
             + 4 * B_ * nH * N * N * hd        # QK^T and PV
             + 2 * B_ * N * C * C)             # output projection
    bytes_accessed = (x.size * x.dtype.itemsize
                      + B_ * N * C * jnp.dtype(out_dtype).itemsize
                      + (wqkv.size + wproj.size) * 2
                      + (bqkv.size + bproj.size + relb.size) * 4
                      + (wmask.size * 2 if wmask is not None else 0))
    cost = pl.CostEstimate(flops=flops, transcendentals=B_ * nH * N * N,
                           bytes_accessed=bytes_accessed)

    # VMEM limit from the actual per-step blocks (double-buffered I/O +
    # resident weights + live intermediates), clamped to v7x's 64 MiB.
    block_io = Bt * N * C * (x.dtype.itemsize + jnp.dtype(out_dtype).itemsize)
    if wmask is not None:
        block_io += Bt * N * N * 2
    resident = ((wqkv.size + wproj.size) * 2
                + (bqkv.size + bproj.size + relb.size) * 4)
    live = Bt * (N * 3 * C * 6 + 3 * nH * N * hd * 2
                 + 3 * nH * N * N * 4 + N * C * 6)
    vmem_limit = int(min(64 << 20,
                         max(32 << 20,
                             2 * block_io + resident + live + (4 << 20))))

    # TODO(synk): attn_drop / proj_drop omitted (p=0.0 default / eval mode => identity).
    out = pl.pallas_call(
        functools.partial(_window_attn_kernel, num_heads=nH),
        out_shape=jax.ShapeDtypeStruct((G, Bt * N, C), out_dtype),
        grid=(G,),
        in_specs=in_specs,
        out_specs=pl.BlockSpec((1, Bt * N, C), lambda i: (i, 0, 0)),
        compiler_params=pltpu.CompilerParams(
            dimension_semantics=("parallel",),
            vmem_limit_bytes=vmem_limit),
        cost_estimate=cost,
    )(*inputs)
    return out.reshape(B_, N, C)


# -----------------------------------------------------------------------------
# Helpers: relative-position index and a pure-JAX f32 reference
# -----------------------------------------------------------------------------
def _compute_relative_position_index(window_size):
    """Same rpi construction as the Swin/CFAT 3D reference."""
    wd, wh, ww = window_size
    coords = jnp.stack(jnp.meshgrid(jnp.arange(wd), jnp.arange(wh),
                                    jnp.arange(ww), indexing="ij"))
    coords_flat = coords.reshape(3, -1)
    rel = coords_flat[:, :, None] - coords_flat[:, None, :]
    rel = jnp.transpose(rel, (1, 2, 0)).astype(jnp.int32)
    rel = rel + jnp.array([wd - 1, wh - 1, ww - 1], jnp.int32)
    rel = rel * jnp.array([(2 * wh - 1) * (2 * ww - 1), 2 * ww - 1, 1],
                          jnp.int32)
    return rel.sum(-1)


def _reference(x, rpi, params, *, window_size, num_heads, qk_scale=None,
               mask=None, sp_mask=None):
    """Pure-JAX f32 reference of the PyTorch forward (parity check only)."""
    B_, N, C = x.shape
    nH = num_heads
    hd = C // nH
    scale = qk_scale if qk_scale is not None else hd ** (-0.5)
    qkv = x @ params["qkv_weight"].T + params["qkv_bias"]
    qkv = qkv.reshape(B_, N, 3, nH, hd).transpose(2, 0, 3, 1, 4)
    q, k, v = qkv[0] * scale, qkv[1], qkv[2]
    attn = q @ jnp.swapaxes(k, -1, -2)
    table = params["relative_position_bias_table"]
    relb = table[rpi.reshape(-1)].reshape(N, N, nH).transpose(2, 0, 1)
    attn = attn + relb[None]
    if sp_mask is not None:
        nP = sp_mask.shape[0]
        attn = attn.reshape(B_ // nP, nP, nH, N, N) + sp_mask[None, :, None]
        attn = attn.reshape(B_, nH, N, N)
        if mask is not None:
            nW = mask.shape[0]
            attn = attn.reshape(B_ // nW, nW, nH, N, N) + mask[None, :, None]
            attn = attn.reshape(B_, nH, N, N)
    attn = jax.nn.softmax(attn, axis=-1)
    out = jnp.swapaxes(attn @ v, 1, 2).reshape(B_, N, C)
    return out @ params["proj_weight"].T + params["proj_bias"]


if __name__ == "__main__":
    # Small shapes: dim=32, window_size=(2,4,4) -> N=32 tokens, 4 heads, 8 windows.
    dim, num_heads = 32, 4
    window_size = (2, 4, 4)
    N = window_size[0] * window_size[1] * window_size[2]
    B_ = 8

    key = jax.random.PRNGKey(0)
    kx, kt, kw1, kb1, kw2, kb2 = jax.random.split(key, 6)
    x = jax.random.normal(kx, (B_, N, dim), jnp.float32)

    num_rel = ((2 * window_size[0] - 1) * (2 * window_size[1] - 1)
               * (2 * window_size[2] - 1))
    bound = 1.0 / math.sqrt(dim)
    params = {
        "relative_position_bias_table":
            0.02 * jax.random.normal(kt, (num_rel, num_heads), jnp.float32),
        "qkv_weight": jax.random.uniform(kw1, (3 * dim, dim), jnp.float32,
                                         -bound, bound),
        "qkv_bias": jax.random.uniform(kb1, (3 * dim,), jnp.float32,
                                       -bound, bound),
        "proj_weight": jax.random.uniform(kw2, (dim, dim), jnp.float32,
                                          -bound, bound),
        "proj_bias": jax.random.uniform(kb2, (dim,), jnp.float32,
                                        -bound, bound),
    }
    rpi = _compute_relative_position_index(window_size)

    fwd = jax.jit(functools.partial(window_attention_3d_s,
                                    window_size=window_size,
                                    num_heads=num_heads))
    y = jax.block_until_ready(fwd(x, rpi, params))

    assert y.shape == (B_, N, dim) and y.dtype == x.dtype
    assert bool(jnp.all(jnp.isfinite(y)))

    # Parity vs. an f32 pure-JAX reference (bf16 MXU operands + approx
    # reciprocal => relaxed tolerance, documented divergence from PyTorch f32).
    y_ref = _reference(x, rpi, params, window_size=window_size,
                       num_heads=num_heads)
    err = float(jnp.max(jnp.abs(y - y_ref)))
    assert err < 1e-1, f"max |err| vs reference too large: {err}"
    print("KERNEL_OK")
</pallas_src>

<mosaic_0001>
module attributes {stable_mosaic.version = 11 : i64} {
  func.func @_window_attn_kernel(%arg0: i32, %arg1: memref<1x128x32xf32, #tpu.memory_space<vmem>>, %arg2: memref<4x32x32xf32, #tpu.memory_space<vmem>>, %arg3: memref<32x96xbf16, #tpu.memory_space<vmem>>, %arg4: memref<1x96xf32, #tpu.memory_space<vmem>>, %arg5: memref<32x32xbf16, #tpu.memory_space<vmem>>, %arg6: memref<1x32xf32, #tpu.memory_space<vmem>>, %arg7: memref<1x128x32xf32, #tpu.memory_space<vmem>>) attributes {dimension_semantics = [#tpu.dimension_semantics<parallel>], iteration_bounds = array<i64: 2>, scalar_prefetch = 0 : i64, scratch_operands = 0 : i64, tpu.core_type = #tpu.core_type<tc>, window_params = [{transform_indices = @transform_0, window_bounds = array<i64: 1, 128, 32>}, {pipeline_mode = #tpu.pipeline_mode<synchronous>, transform_indices = @transform_1, window_bounds = array<i64: 4, 32, 32>}, {pipeline_mode = #tpu.pipeline_mode<synchronous>, transform_indices = @transform_2, window_bounds = array<i64: 32, 96>}, {pipeline_mode = #tpu.pipeline_mode<synchronous>, transform_indices = @transform_3, window_bounds = array<i64: 1, 96>}, {pipeline_mode = #tpu.pipeline_mode<synchronous>, transform_indices = @transform_4, window_bounds = array<i64: 32, 32>}, {pipeline_mode = #tpu.pipeline_mode<synchronous>, transform_indices = @transform_5, window_bounds = array<i64: 1, 32>}, {transform_indices = @transform_6, window_bounds = array<i64: 1, 128, 32>}]} {
    %c0 = arith.constant 0 : index
    %c0_0 = arith.constant 0 : index
    %c0_1 = arith.constant 0 : index
    %0 = vector.load %arg1[%c0, %c0_0, %c0_1] : memref<1x128x32xf32, #tpu.memory_space<vmem>>, vector<1x128x32xf32>
    %1 = vector.shape_cast %0 : vector<1x128x32xf32> to vector<128x32xf32>
    %2 = arith.truncf %1 : vector<128x32xf32> to vector<128x32xbf16>
    %c0_2 = arith.constant 0 : index
    %c0_3 = arith.constant 0 : index
    %3 = vector.load %arg3[%c0_2, %c0_3] : memref<32x96xbf16, #tpu.memory_space<vmem>>, vector<32x96xbf16>
    %cst = arith.constant dense<0.000000e+00> : vector<128x96xf32>
    %4 = tpu.matmul %2, %3, %cst {dimension_numbers = #tpu.dot_dimension_numbers<[1], [0], [0], [1], [0, 0, 1, 1], [], []>} : vector<128x32xbf16>, vector<32x96xbf16>, vector<128x96xf32> -> vector<128x96xf32>
    %c0_4 = arith.constant 0 : index
    %c0_5 = arith.constant 0 : index
    %5 = vector.load %arg4[%c0_4, %c0_5] : memref<1x96xf32, #tpu.memory_space<vmem>>, vector<1x96xf32>
    %6 = vector.broadcast %5 : vector<1x96xf32> to vector<128x96xf32>
    %7 = arith.addf %4, %6 : vector<128x96xf32>
    %8 = arith.truncf %7 : vector<128x96xf32> to vector<128x96xbf16>
    %9 = vector.shape_cast %8 : vector<128x96xbf16> to vector<4x32x96xbf16>
    %10 = tpu.transpose %9, [0, 2, 1] : vector<4x32x96xbf16> -> vector<4x96x32xbf16>
    %11 = vector.extract_strided_slice %10 {offsets = [0, 0, 0], sizes = [4, 32, 32], strides = [1, 1, 1]} : vector<4x96x32xbf16> to vector<4x32x32xbf16>
    %12 = vector.shape_cast %11 : vector<4x32x32xbf16> to vector<16x8x32xbf16>
    %13 = tpu.transpose %12, [0, 2, 1] : vector<16x8x32xbf16> -> vector<16x32x8xbf16>
    %14 = vector.extract_strided_slice %10 {offsets = [0, 32, 0], sizes = [4, 32, 32], strides = [1, 1, 1]} : vector<4x96x32xbf16> to vector<4x32x32xbf16>
    %15 = vector.shape_cast %14 : vector<4x32x32xbf16> to vector<16x8x32xbf16>
    %16 = tpu.transpose %15, [0, 2, 1] : vector<16x8x32xbf16> -> vector<16x32x8xbf16>
    %17 = vector.extract_strided_slice %10 {offsets = [0, 64, 0], sizes = [4, 32, 32], strides = [1, 1, 1]} : vector<4x96x32xbf16> to vector<4x32x32xbf16>
    %18 = vector.shape_cast %17 : vector<4x32x32xbf16> to vector<16x8x32xbf16>
    %19 = tpu.transpose %18, [0, 2, 1] : vector<16x8x32xbf16> -> vector<16x32x8xbf16>
    "tpu.trace_start"() <{level = 10 : i32, message = "bqd,bkd->bqk"}> : () -> ()
    %cst_6 = arith.constant dense<0.000000e+00> : vector<16x32x32xf32>
    %20 = tpu.matmul %13, %16, %cst_6 {dimension_numbers = #tpu.dot_dimension_numbers<[2], [2], [1], [1], [0, 0, 0, 1, 1, 1], [0], [0]>} : vector<16x32x8xbf16>, vector<16x32x8xbf16>, vector<16x32x32xf32> -> vector<16x32x32xf32>
    "tpu.trace_stop"() : () -> ()
    %21 = vector.shape_cast %20 : vector<16x32x32xf32> to vector<4x4x32x32xf32>
    %c0_7 = arith.constant 0 : index
    %c0_8 = arith.constant 0 : index
    %c0_9 = arith.constant 0 : index
    %22 = vector.load %arg2[%c0_7, %c0_8, %c0_9] : memref<4x32x32xf32, #tpu.memory_space<vmem>>, vector<4x32x32xf32>
    %23 = vector.shape_cast %22 : vector<4x32x32xf32> to vector<1x4x32x32xf32>
    %24 = vector.broadcast %23 : vector<1x4x32x32xf32> to vector<4x4x32x32xf32>
    %25 = arith.addf %21, %24 : vector<4x4x32x32xf32>
    %26 = vector.shape_cast %25 : vector<4x4x32x32xf32> to vector<16x32x32xf32>
    %cst_10 = arith.constant dense<0xFF800000> : vector<16x32xf32>
    %27 = vector.multi_reduction <maximumf>, %26, %cst_10 [2] : vector<16x32x32xf32> to vector<16x32xf32>
    %28 = vector.shape_cast %27 : vector<16x32xf32> to vector<16x32x1xf32>
    %29 = vector.broadcast %28 : vector<16x32x1xf32> to vector<16x32x32xf32>
    %30 = arith.subf %26, %29 : vector<16x32x32xf32>
    %31 = math.exp %30 : vector<16x32x32xf32>
    %cst_11 = arith.constant dense<0.000000e+00> : vector<16x32xf32>
    %32 = vector.multi_reduction <add>, %31, %cst_11 [2] : vector<16x32x32xf32> to vector<16x32xf32>
    %33 = vector.shape_cast %32 : vector<16x32xf32> to vector<16x32x1xf32>
    %34 = tpu.reciprocal %33 {approx = true} : vector<16x32x1xf32> -> vector<16x32x1xf32>
    %35 = vector.broadcast %34 : vector<16x32x1xf32> to vector<16x32x32xf32>
    %36 = arith.mulf %31, %35 : vector<16x32x32xf32>
    %37 = arith.truncf %36 : vector<16x32x32xf32> to vector<16x32x32xbf16>
    "tpu.trace_start"() <{level = 10 : i32, message = "bqk,bkd->bqd"}> : () -> ()
    %cst_12 = arith.constant dense<0.000000e+00> : vector<16x32x8xf32>
    %38 = tpu.matmul %37, %19, %cst_12 {dimension_numbers = #tpu.dot_dimension_numbers<[2], [1], [1], [2], [0, 0, 0, 1, 1, 2], [0], [0]>} : vector<16x32x32xbf16>, vector<16x32x8xbf16>, vector<16x32x8xf32> -> vector<16x32x8xf32>
    "tpu.trace_stop"() : () -> ()
    %39 = arith.truncf %38 : vector<16x32x8xf32> to vector<16x32x8xbf16>
    %40 = tpu.transpose %39, [0, 2, 1] : vector<16x32x8xbf16> -> vector<16x8x32xbf16>
    %41 = vector.shape_cast %40 : vector<16x8x32xbf16> to vector<4x32x32xbf16>
    %42 = tpu.transpose %41, [0, 2, 1] : vector<4x32x32xbf16> -> vector<4x32x32xbf16>
    %43 = vector.shape_cast %42 : vector<4x32x32xbf16> to vector<128x32xbf16>
    %c0_13 = arith.constant 0 : index
    %c0_14 = arith.constant 0 : index
    %44 = vector.load %arg5[%c0_13, %c0_14] : memref<32x32xbf16, #tpu.memory_space<vmem>>, vector<32x32xbf16>
    %cst_15 = arith.constant dense<0.000000e+00> : vector<128x32xf32>
    %45 = tpu.matmul %43, %44, %cst_15 {dimension_numbers = #tpu.dot_dimension_numbers<[1], [0], [0], [1], [0, 0, 1, 1], [], []>} : vector<128x32xbf16>, vector<32x32xbf16>, vector<128x32xf32> -> vector<128x32xf32>
    %c0_16 = arith.constant 0 : index
    %c0_17 = arith.constant 0 : index
    %46 = vector.load %arg6[%c0_16, %c0_17] : memref<1x32xf32, #tpu.memory_space<vmem>>, vector<1x32xf32>
    %47 = vector.broadcast %46 : vector<1x32xf32> to vector<128x32xf32>
    %48 = arith.addf %45, %47 : vector<128x32xf32>
    %c0_18 = arith.constant 0 : index
    %c0_19 = arith.constant 0 : index
    %c0_20 = arith.constant 0 : index
    %49 = vector.load %arg7[%c0_18, %c0_19, %c0_20] : memref<1x128x32xf32, #tpu.memory_space<vmem>>, vector<1x128x32xf32>
    %50 = vector.shape_cast %49 : vector<1x128x32xf32> to vector<128x32xf32>
    %51 = vector.shape_cast %48 : vector<128x32xf32> to vector<1x128x32xf32>
    tpu.vector_store %arg7[%c0_18, %c0_19, %c0_20], %51 {strides = array<i32>} : memref<1x128x32xf32, #tpu.memory_space<vmem>>, vector<1x128x32xf32>,
    return
  }
  func.func @transform_0(%arg0: i32) -> (i32, i32, i32) {
    %c0_i32 = arith.constant 0 : i32
    %c0_i32_0 = arith.constant 0 : i32
    %c0_i32_1 = arith.constant 0 : i32
    return %arg0, %c0_i32, %c0_i32_0 : i32, i32, i32
  }
  func.func @transform_1(%arg0: i32) -> (i32, i32, i32) {
    %c0_i32 = arith.constant 0 : i32
    %c0_i32_0 = arith.constant 0 : i32
    %c0_i32_1 = arith.constant 0 : i32
    %c0_i32_2 = arith.constant 0 : i32
    return %c0_i32, %c0_i32_0, %c0_i32_1 : i32, i32, i32
  }
  func.func @transform_2(%arg0: i32) -> (i32, i32) {
    %c0_i32 = arith.constant 0 : i32
    %c0_i32_0 = arith.constant 0 : i32
    %c0_i32_1 = arith.constant 0 : i32
    return %c0_i32, %c0_i32_0 : i32, i32
  }
  func.func @transform_3(%arg0: i32) -> (i32, i32) {
    %c0_i32 = arith.constant 0 : i32
    %c0_i32_0 = arith.constant 0 : i32
    %c0_i32_1 = arith.constant 0 : i32
    return %c0_i32, %c0_i32_0 : i32, i32
  }
  func.func @transform_4(%arg0: i32) -> (i32, i32) {
    %c0_i32 = arith.constant 0 : i32
    %c0_i32_0 = arith.constant 0 : i32
    %c0_i32_1 = arith.constant 0 : i32
    return %c0_i32, %c0_i32_0 : i32, i32
  }
  func.func @transform_5(%arg0: i32) -> (i32, i32) {
    %c0_i32 = arith.constant 0 : i32
    %c0_i32_0 = arith.constant 0 : i32
    %c0_i32_1 = arith.constant 0 : i32
    return %c0_i32, %c0_i32_0 : i32, i32
  }
  func.func @transform_6(%arg0: i32) -> (i32, i32, i32) {
    %c0_i32 = arith.constant 0 : i32
    %c0_i32_0 = arith.constant 0 : i32
    %c0_i32_1 = arith.constant 0 : i32
    return %arg0, %c0_i32, %c0_i32_0 : i32, i32, i32
  }
}

</mosaic_0001>

<bundles_post_ra>
// kernel: window_attention_3d_s.1
= control target key start
LH: loop header
LB: loop body
LE: loop exit
PB: predicated region body
PF: predicated region fallthrough
CT: control target
= control target key end

     0   :  { %11 = vsyncpa [#allocation3], 0  ;;  %s6312_s0 = inlined_call_operand.vmem [shape: f32[2,128,32], index: 0, kind: input, shape index: {}]   ;;  %s6313_s1 = inlined_call_operand.vmem [shape: f32[4,32,32], index: 1, kind: input, shape index: {}]   ;;  %s6314_s2 = inlined_call_operand.vmem [shape: bf16[32,96], index: 2, kind: input, shape index: {}]   ;;  %s6315_s3 = inlined_call_operand.vmem [shape: f32[1,96], index: 3, kind: input, shape index: {}]   ;;  %s6316_s4 = inlined_call_operand.vmem [shape: bf16[32,32], index: 4, kind: input, shape index: {}]   ;;  %s6317_s5 = inlined_call_operand.vmem [shape: f32[1,32], index: 5, kind: input, shape index: {}]   ;;  %s6318_s6 = inlined_call_operand.hbm [shape: f32[2,128,32], index: 6, kind: output, shape index: {}]  }
   0x1   :  { %13 = vsyncpa [#allocation3 + $0x1], 0  ;;  %s5134_s21 = smov 0   ;;  %s5136_s22 = smov 0  }
   0x2   :  { %s5138_s23 = smov 0   ;;  %s5140_s24 = smov 0  }
   0x3 LB: > { %s5155_s25 = sadd.s32 4294967295, %s5094_s24   ;;  %s4194_s26 = sadd.s32 4294967294, %s5094_s24   ;;  %s5094_s24 = sphi %s5140_s24, %s6447_s24   ;;  %s5090_s23 = sphi %s5138_s23, %s6446_s23   ;;  %s5086_s22 = sphi %s5136_s22, %s6445_s22   ;;  %s5082_s21 = sphi %s5134_s21, %s6444_s21  }
   0x4   : > { %s5159_s27 = sadd.s32 1, %s5094_s24   ;;  %s157_s28 = sadd.s32 1, %s5090_s23 }
   0x5   : > { %s154_s29 = ssub.s32 %s5094_s24, %s5159_s27  ;;  %p167_p0 = scmp.ne.s32.totalorder %s5090_s23, %s5086_s22 }
   0x6   : > { %p155_p1 = scmp.eq.s32.totalorder %s154_s29, 0  ;;  %p168_p2 = scmp.eq.s32.totalorder %s5155_s25, 1 }
   0x7   : > { %p173_p3 = scmp.ne.s32.totalorder %s5086_s22, %s5082_s21  ;;  %p174_p4 = scmp.eq.s32.totalorder %s4194_s26, 1 }
   0x8   : > { %s5170_s30 = scalar_select %p155_p1, %s5090_s23, %s157_s28  }
   0x9   : > { %p5172_p5 = por %p168_p2, %p167_p0  ;;  %p5176_p6 = por %p174_p4, %p173_p3 }
   0xa   : > { %p4197_p7 = scmp.ge.s32.totalorder %s5094_s24, 1  ;;  %p215_p8 = scmp.lt.s32.totalorder %s5094_s24, 3 }
   0xc   : > { %p216_p9 = pnand %p4197_p7, %p215_p8 }
   0xe   : > { %219 = sbr.rel (%p216_p9) target bundleno = 1804 (0x70c), region = 44 }
  0x15   : > { %v4772_v0 = vld [vmem:[%s6314_s2] sm:$0xff]   ;;  %p245_p10 = scmp.lt.s32.totalorder %s5155_s25, 1  ;;  %v4773_v1 = vld [vmem:[%s6314_s2 + $0x8] sm:$0xff]   ;;  %vm298_vm0 = vcmask 261120   ;;  %vm891_vm1 = vcmask 1043456   ;;  %vm884_vm2 = vcmask 64512  }
  0x16   : > { %4466 = vmatprep.subr.bf16.mxu0 %v4772_v0  ;;  %v4201_v27 = vld [vmem:[%s6315_s3] ss:$0 sm:$0xff]  ;;  %s242_s11 = sand.u32 1, %s5086_s22   ;;  %s4349_s16 = sshll.u32 %s5155_s25, 11 }
  0x17   : > { %s246_s13 = scalar_select %p245_p10, %s5155_s25, 1  ;;  %4467 = vmatpush3.bf16.msra.mxu0 %v4772_v0 }
  0x18   : > { %4468 = vmatprep.subr.bf16.mxu0 %v4773_v1  ;;  %s4198_s12 = sshll.u32 %s242_s11, 7  ;;  %s6259_s20 = scalar_lea.hbm %s6318_s6, %s4349_s16 }
  0x19   : > { %s4348_s14 = sshll.u32 %s246_s13, 7  ;;  %s6226_s15 = scalar_lea.vmem [#allocation2], %s4198_s12 }
  0x1a   : > { %s5193_s17 = scalar_lea.vmem %s6312_s0, %s4348_s14  ;;  %s6271_s25 = scalar_lea.sflag [#allocation3], %s242_s11 }
  0x1b   : > { %v251_v2 = vld [vmem:[%s5193_s17] sm:$0xff]  ;;  %v252_v3 = vld [vmem:[%s5193_s17 + $0x8] sm:$0xff]  ;;  %v253_v4 = vld [vmem:[%s5193_s17 + $0x10] sm:$0xff]  ;;  %4469 = vmatpush3.bf16.msra.mxu0 %v4773_v1  ;;  %s5096_s28 = smov [#allocation2]  }
  0x1c   : > { %v267_v5 = vpack.c.bf16 %v252_v3, %v251_v2  ;;  %v254_v6 = vld [vmem:[%s5193_s17 + $0x18] sm:$0xff]  ;;  %v255_v7 = vld [vmem:[%s5193_s17 + $0x20] sm:$0xff]  ;;  %v256_v8 = vld [vmem:[%s5193_s17 + $0x28] sm:$0xff]  ;;  %s5036_s29 = sshll.u32 %s5096_s28, 4  ;;  %s5037_s29 = int_to_ptr.vmem [resolvable:$false] %s5036_s29 }
  0x1d   : > { %v268_v9 = vpack.c.bf16 %v254_v6, %v253_v4  ;;  %v269_v10 = vpack.c.bf16 %v256_v8, %v255_v7  ;;  %v257_v11 = vld [vmem:[%s5193_s17 + $0x30] sm:$0xff]  ;;  %v258_v12 = vld [vmem:[%s5193_s17 + $0x38] sm:$0xff]  ;;  %v259_v13 = vld [vmem:[%s5193_s17 + $0x40] sm:$0xff]  ;;  %s5038_s9 = scalar_lea.vmem %s5037_s29, 4096 }
  0x1e   : > { %4470 = vmatprep.mubr.msk.bf16.mxu0 %vm298_vm0, %v267_v5  ;;  %v260_v14 = vld [vmem:[%s5193_s17 + $0x48] sm:$0xff]  ;;  %v270_v15 = vpack.c.bf16 %v258_v12, %v257_v11  ;;  %v261_v17 = vld [vmem:[%s5193_s17 + $0x50] sm:$0xff]  ;;  %v262_v18 = vld [vmem:[%s5193_s17 + $0x58] sm:$0xff] }
  0x1f   : > { %4471 = vmatmul.mubr.msk.bf16.vlgmr.msra.gmra.mrb[0].mxu0 %vm298_vm0, %v268_v9  ;;  %v271_v16 = vpack.c.bf16 %v260_v14, %v259_v13  ;;  %v263_v19 = vld [vmem:[%s5193_s17 + $0x60] sm:$0xff]  ;;  %v264_v20 = vld [vmem:[%s5193_s17 + $0x68] sm:$0xff]  ;;  %v272_v21 = vpack.c.bf16 %v262_v18, %v261_v17  ;;  %v265_v23 = vld [vmem:[%s5193_s17 + $0x70] sm:$0xff] }
  0x20   : > { %4474 = vmatprep.mubr.msk.bf16.mxu0 %vm298_vm0, %v269_v10  ;;  %v273_v22 = vpack.c.bf16 %v264_v20, %v263_v19  ;;  %v266_v24 = vld [vmem:[%s5193_s17 + $0x78] sm:$0xff]  ;;  %s4132_s17 = sshll.u32 %s6226_s15, 4  ;;  %s6261_s17 = int_to_ptr.vmem [resolvable:$true] %s4132_s17 }
  0x21   : > { %v274_v25 = vpack.c.bf16 %v266_v24, %v265_v23  ;;  %s5032_s26 = scalar_lea.vmem %s6261_s17, 2048  ;;  %p5039_p0 = scmp.lt.s32.totalorder %s6261_s17, %s5037_s29 }
  0x22   : > { %p5033_p11 = scmp.ne.s32.totalorder %s6261_s17, %s5032_s26  ;;  %p5040_p1 = scmp.lt.s32.totalorder %s5038_s9, %s5032_s26 }
  0x24   : > { %p5034_p12 = pnand %p5033_p11, %p5172_p5  ;;  %p5041_p2 = por %p5040_p1, %p5039_p0 }
  0x26   : > { %p5035_p13 = pneg %p5034_p12 }
  0x27   : > { %4475 = vmatmul.mubr.msk.bf16.gmra.mrb[4].mxu0 %vm298_vm0, %v270_v15 }
  0x28   : > { %4478 = vmatprep.mubr.msk.bf16.mxu0 %vm298_vm0, %v271_v16  ;;  %p5042_p3 = pnand %p5041_p2, %p5035_p13 }
  0x2f   : > { %4479 = vmatmul.mubr.msk.bf16.gmra.mrb[8].mxu0 %vm298_vm0, %v272_v21 }
  0x30   : > { %4482 = vmatprep.mubr.msk.bf16.mxu0 %vm298_vm0, %v273_v22 }
  0x37   : > { %4483 = vmatmul.mubr.msk.bf16.gmra.mrb[12].mxu0 %vm298_vm0, %v274_v25 }
  0xf2   : > { %v4472_v26 = vpop.f32.mrb[0].mxu0 }
  0xf3   : > { %v357_v28 = vpop.f32.mrb[1].mxu0  ;;  %v366_v30 = vadd.f32 %v4472_v26, %v4201_v27 }
  0xf4   : > { %v4473_v29 = vpop.f32.mrb[2].mxu0  ;;  %v358_v33 = vadd.f32 %v4201_v27, %v357_v28 }
  0xf5   : > { %v369_v31 = vadd.f32 %v4473_v29, %v4201_v27  ;;  %v360_v32 = vpop.f32.mrb[3].mxu0 }
  0xf6   : > { %v361_v34 = vadd.f32 %v4201_v27, %v360_v32 }
  0xf7   : > { %v421_v35 = vpack.c.bf16 %v369_v31, %v366_v30 }
  0xf8   : > { %v420_v36 = vpack.c.bf16 %v361_v34, %v358_v33 }
  0xfa   : > { %428 = vxpose.xlu0.c.b16.start [1/2] (short) (narrow) %v420_v36, 96  ;;  %v4476_v37 = vpop.f32.mrb[4].mxu0 }
  0xfb   : > { %v382_v38 = vadd.f32 %v4476_v37, %v4201_v27  ;;  %v373_v39 = vpop.f32.mrb[5].mxu0 }
  0xfc   : > { %v374_v40 = vadd.f32 %v4201_v27, %v373_v39  ;;  %v4477_v41 = vpop.f32.mrb[6].mxu0 }
  0xfd   : > { %v385_v42 = vadd.f32 %v4477_v41, %v4201_v27  ;;  %v376_v43 = vpop.f32.mrb[7].mxu0 }
  0xfe   : > { %429 = vxpose.xlu0.c.b16.end [2/2] (short) (narrow) %v421_v35, 96  ;;  %v377_v44 = vadd.f32 %v4201_v27, %v376_v43 }
  0xff   : > { %v423_v45 = vpack.c.bf16 %v385_v42, %v382_v38 }
 0x100   : > { %v422_v46 = vpack.c.bf16 %v377_v44, %v374_v40 }
 0x102   : > { %444 = vxpose.xlu1.c.b16.start [1/2] (short) (narrow) %v422_v46, 96  ;;  %v4480_v47 = vpop.f32.mrb[8].mxu0 }
 0x103   : > { %v398_v48 = vadd.f32 %v4480_v47, %v4201_v27  ;;  %v389_v49 = vpop.f32.mrb[9].mxu0 }
 0x104   : > { %v390_v50 = vadd.f32 %v4201_v27, %v389_v49  ;;  %v4481_v51 = vpop.f32.mrb[10].mxu0 }
 0x105   : > { %v401_v52 = vadd.f32 %v4481_v51, %v4201_v27  ;;  %v392_v53 = vpop.f32.mrb[11].mxu0 }
 0x106   : > { %445 = vxpose.xlu1.c.b16.end [2/2] (short) (narrow) %v423_v45, 96  ;;  %v393_v54 = vadd.f32 %v4201_v27, %v392_v53 }
 0x107   : > { %v425_v55 = vpack.c.bf16 %v401_v52, %v398_v48 }
 0x108   : > { %v424_v56 = vpack.c.bf16 %v393_v54, %v390_v50 }
 0x10a   : > { %v4484_v57 = vpop.f32.mrb[12].mxu0 }
 0x10b   : > { %v414_v58 = vadd.f32 %v4484_v57, %v4201_v27  ;;  %v405_v59 = vpop.f32.mrb[13].mxu0 }
 0x10c   : > { %v406_v60 = vadd.f32 %v4201_v27, %v405_v59  ;;  %v4485_v61 = vpop.f32.mrb[14].mxu0 }
 0x10d   : > { %v417_v62 = vadd.f32 %v4485_v61, %v4201_v27  ;;  %v408_v63 = vpop.f32.mrb[15].mxu0 }
 0x10e   : > { %v409_v0 = vadd.f32 %v4201_v27, %v408_v63 }
 0x10f   : > { %460 = vxpose.xlu0.c.b16.start [1/2] (short) (narrow) %v424_v56, 96  ;;  %v427_v1 = vpack.c.bf16 %v417_v62, %v414_v58 }
 0x110   : > { %v426_v2 = vpack.c.bf16 %v409_v0, %v406_v60 }
 0x113   : > { %461 = vxpose.xlu0.c.b16.end [2/2] (short) (narrow) %v425_v55, 96 }
 0x160   : > { %v436_v3 = vpop.trf.xlu0 }
 0x161   : > { %v4212_v4 = vcombine.low %v436_v3, %v436_v3  ;;  %v4213_v7 = vcombine.high %v436_v3, %v436_v3 }
 0x163   : > { %548 = vxpose.xlu1.c.b16.start.end [1/1] (short) (narrow) %v4212_v4, 32 }
 0x164   : > { %v437_v5 = vpop.trf.xlu0 }
 0x165   : > { %v4214_v6 = vcombine.low %v437_v5, %v437_v5  ;;  %v4215_v27 = vcombine.high %v437_v5, %v437_v5 }
 0x167   : > { %580 = vxpose.xlu0.c.b16.start.end [1/1] (short) (narrow) %v4214_v6, 32 }
 0x168   : > { %564 = vxpose.xlu1.c.b16.start.end [1/1] (short) (narrow) %v4213_v7, 32  ;;  %v452_v8 = vpop.trf.xlu1  ;;  %v438_v9 = vpop.trf.xlu0 }
 0x169   : > { %v4216_v10 = vcombine.low %v452_v8, %v452_v8  ;;  %v4228_v11 = vcombine.low %v438_v9, %v438_v9  ;;  %v4229_v12 = vcombine.high %v438_v9, %v438_v9  ;;  %v4217_v15 = vcombine.high %v452_v8, %v452_v8 }
 0x16b   : > { %4698 = vmatprep.subr.msk.bf16.mxu0 %vm891_vm1, %v4228_v11  ;;  %v893_v13 = vsel %vm891_vm1, %v4228_v11, 0  ;;  %v951_v43 = vsel %vm891_vm1, %v4229_v12, 0 }
 0x16c   : > { %612 = vxpose.xlu0.c.b16.start.end [1/1] (short) (narrow) %v4216_v10, 32  ;;  %v439_v14 = vpop.trf.xlu0  ;;  %4487 = vmatpush3.bf16.msra.mxu0 %v893_v13  ;;  %v453_v20 = vpop.trf.xlu1 }
 0x16d   : > { %476 = vxpose.xlu1.c.b16.start [1/2] (short) (narrow) %v426_v2, 96  ;;  %4699 = vmatprep.subr.msk.bf16.mxu0 %vm891_vm1, %v4229_v12  ;;  %v4230_v16 = vcombine.low %v439_v14, %v439_v14  ;;  %v4231_v17 = vcombine.high %v439_v14, %v439_v14  ;;  %v4218_v21 = vcombine.low %v453_v20, %v453_v20 }
 0x16e   : > { %v4219_v28 = vcombine.high %v453_v20, %v453_v20 }
 0x16f   : > { %4700 = vmatprep.subr.msk.bf16.mxu1 %vm891_vm1, %v4230_v16  ;;  %v1009_v19 = vsel %vm891_vm1, %v4230_v16, 0  ;;  %v1067_v47 = vsel %vm891_vm1, %v4231_v17, 0 }
 0x170   : > { %v5225_v18 = vpop.trf.xlu0  ;;  %4499 = vmatpush3.bf16.msra.mxu1 %v1009_v19  ;;  %v454_v31 = vpop.trf.xlu1 }
 0x171   : > { %477 = vxpose.xlu1.c.b16.end [2/2] (short) (narrow) %v427_v1, 96  ;;  %628 = vxpose.xlu0.c.b16.start.end [1/1] (short) (narrow) %v4217_v15, 32  ;;  %v4233_v42 = vcombine.high %v454_v31, %v454_v31  ;;  %v4232_v46 = vcombine.low %v454_v31, %v454_v31 }
 0x172   : > { %4701 = vmatprep.subr.msk.bf16.mxu1 %vm891_vm1, %v4231_v17 }
 0x173   : > { %v1183_v51 = vsel %vm891_vm1, %v4233_v42, 0  ;;  %v1125_v7 = vsel %vm891_vm1, %v4232_v46, 0 }
 0x174   : > { %v5230_v22 = vpop.trf.xlu0  ;;  %v455_v33 = vpop.trf.xlu1 }
 0x175   : > { %v4235_v50 = vcombine.high %v455_v33, %v455_v33  ;;  %v4234_v6 = vcombine.low %v455_v33, %v455_v33 }
 0x176   : > { %644 = vxpose.xlu0.c.b16.start.end [1/1] (short) (narrow) %v4218_v21, 32 }
 0x177   : > { %v1299_v63 = vsel %vm891_vm1, %v4235_v50, 0  ;;  %v1241_v13 = vsel %vm891_vm1, %v4234_v6, 0 }
 0x178   : > { %v468_v23 = vpop.trf.xlu0  ;;  %v5236_v35 = vpop.trf.xlu1 }
 0x179   : > { %v4220_v24 = vcombine.low %v468_v23, %v468_v23  ;;  %v4221_v29 = vcombine.high %v468_v23, %v468_v23  ;;  %6362 = vst [vmem:[#allocation5_spill] sm:$0xff] %v5236_v35 }
 0x17b   : > { %676 = vxpose.xlu0.c.b16.start.end [1/1] (short) (narrow) %v4220_v24, 32 }
 0x17c   : > { %v469_v25 = vpop.trf.xlu0  ;;  %v5240_v37 = vpop.trf.xlu1 }
 0x17d   : > { %v4222_v26 = vcombine.low %v469_v25, %v469_v25  ;;  %v4223_v30 = vcombine.high %v469_v25, %v469_v25  ;;  %6364 = vst [vmem:[#allocation7_spill] sm:$0xff] %v5240_v37 }
 0x180   : > { %708 = vxpose.xlu0.c.b16.start.end [1/1] (short) (narrow) %v4222_v26, 32  ;;  %v5232_v32 = vpop.trf.xlu0 }
 0x181   : > { %v4237_v62 = vcombine.high %v5232_v32, %v5232_v32  ;;  %v4236_v11 = vcombine.low %v5232_v32, %v5232_v32 }
 0x182   : > { %596 = vxpose.xlu1.c.b16.start.end [1/1] (short) (narrow) %v4215_v27, 32 }
 0x183   : > { %v1415_v14 = vsel %vm891_vm1, %v4237_v62, 0  ;;  %v1357_v21 = vsel %vm891_vm1, %v4236_v11, 0 }
 0x184   : > { %v5234_v34 = vpop.trf.xlu0 }
 0x185   : > { %v4239_v12 = vcombine.high %v5234_v34, %v5234_v34  ;;  %v4238_v19 = vcombine.low %v5234_v34, %v5234_v34 }
 0x187   : > { %660 = vxpose.xlu1.c.b16.start.end [1/1] (short) (narrow) %v4219_v28, 32  ;;  %v1531_v23 = vsel %vm891_vm1, %v4239_v12, 0 }
 0x188   : > { %v5238_v36 = vpop.trf.xlu0 }
 0x189   : > { %6363 = vst [vmem:[#allocation6_spill] sm:$0xff] %v5238_v36 }
 0x18c   : > { %692 = vxpose.xlu1.c.b16.start.end [1/1] (short) (narrow) %v4221_v29, 32  ;;  %v5242_v38 = vpop.trf.xlu0 }
 0x18d   : > { %6365 = vst [vmem:[#allocation8_spill] sm:$0xff] %v5242_v38 }
 0x191   : > { %724 = vxpose.xlu1.c.b16.start.end [1/1] (short) (narrow) %v4223_v30, 32  ;;  %v1473_v30 = vsel %vm891_vm1, %v4238_v19, 0 }
 0x1c9   : > { %v556_v39 = vpop.trf.xlu1 }
 0x1ca   : > { %4488 = vmatprep.mubr.msk.bf16.mxu0 %vm884_vm2, %v556_v39 }
 0x1cd   : > { %v557_v40 = vpop.trf.xlu1  ;;  %v588_v41 = vpop.trf.xlu0 }
 0x1ce   : > { %4489 = vmatmul.mubr.msk.bf16.vlgmr.msra.gmra.mrb[16].mxu0 %vm884_vm2, %v557_v40  ;;  %4500 = vmatprep.mubr.msk.bf16.mxu1 %vm884_vm2, %v588_v41 }
 0x1cf   : > { %4493 = vmatpush3.bf16.msra.mxu0 %v951_v43  ;;  %v4244_v43 = vcombine.low %v5225_v18, %v5225_v18 }
 0x1d0   : > { %4703 = vmatprep.subr.msk.bf16.mxu0 %vm891_vm1, %v4233_v42 }
 0x1d1   : > { %v572_v44 = vpop.trf.xlu1  ;;  %v589_v45 = vpop.trf.xlu0 }
 0x1d2   : > { %4494 = vmatprep.mubr.msk.bf16.mxu0 %vm884_vm2, %v572_v44  ;;  %4501 = vmatmul.mubr.msk.bf16.vlgmr.msra.gmra.mrb[0].mxu1 %vm884_vm2, %v589_v45  ;;  %v4245_v44 = vcombine.high %v5225_v18, %v5225_v18 }
 0x1d3   : > { %4505 = vmatpush3.bf16.msra.mxu1 %v1067_v47 }
 0x1d4   : > { %4702 = vmatprep.subr.msk.bf16.mxu1 %vm891_vm1, %v4232_v46 }
 0x1d5   : > { %v573_v48 = vpop.trf.xlu1  ;;  %v620_v49 = vpop.trf.xlu0 }
 0x1d6   : > { %4495 = vmatmul.mubr.msk.bf16.vlgmr.msra.gmra.mrb[20].mxu0 %vm884_vm2, %v573_v48 }
 0x1d7   : > { %4517 = vmatpush3.bf16.msra.mxu0 %v1183_v51  ;;  %v5326_v51 = vcombine.high %v5230_v22, %v5230_v22 }
 0x1d8   : > { %4705 = vmatprep.subr.msk.bf16.mxu0 %vm891_vm1, %v4235_v50  ;;  %v5322_v50 = vcombine.low %v5230_v22, %v5230_v22  ;;  %v5342_v22 = vld [vmem:[%s6313_s1] sm:$0xff] }
 0x1d9   : > { %v484_v52 = vpop.trf.xlu1  ;;  %v621_v53 = vpop.trf.xlu0  ;;  %6369 = vst [vmem:[#allocation12_spill] sm:$0xff] %v5326_v51 }
 0x1da   : > { %v4225_v54 = vcombine.high %v484_v52, %v484_v52  ;;  %v4224_v55 = vcombine.low %v484_v52, %v484_v52  ;;  %6368 = vst [vmem:[#allocation11_spill] sm:$0xff] %v5322_v50  ;;  %v2637_v52 = vsel %vm298_vm0, %v4244_v43, 0 }
 0x1dc   : > { %756 = vxpose.xlu1.c.b16.start.end [1/1] (short) (narrow) %v4225_v54, 32  ;;  %740 = vxpose.xlu0.c.b16.start.end [1/1] (short) (narrow) %v4224_v55, 32  ;;  %v5337_v54 = vld [vmem:[%s6313_s1 + $0x10] sm:$0xff] }
 0x1dd   : > { %v485_v56 = vpop.trf.xlu1  ;;  %v636_v57 = vpop.trf.xlu0 }
 0x1de   : > { %4518 = vmatprep.mubr.msk.bf16.mxu0 %vm884_vm2, %v636_v57  ;;  %v4227_v58 = vcombine.high %v485_v56, %v485_v56  ;;  %v4226_v59 = vcombine.low %v485_v56, %v485_v56  ;;  %v5347_v56 = vld [vmem:[%s6313_s1 + $0x18] sm:$0xff] }
 0x1e1   : > { %v486_v60 = vpop.trf.xlu1  ;;  %v637_v61 = vpop.trf.xlu0  ;;  %788 = vxpose.xlu1.c.b16.start.end [1/1] (short) (narrow) %v4227_v58, 32  ;;  %772 = vxpose.xlu0.c.b16.start.end [1/1] (short) (narrow) %v4226_v59, 32 }
 0x1e2   : > { %4519 = vmatmul.mubr.msk.bf16.vlgmr.msra.gmra.mrb[24].mxu0 %vm884_vm2, %v637_v61  ;;  %v4241_v20 = vcombine.high %v486_v60, %v486_v60  ;;  %v4240_v28 = vcombine.low %v486_v60, %v486_v60  ;;  %v5355_v60 = vld [vmem:[%s6313_s1 + $0x8] sm:$0xff]  ;;  %v5360_v61 = vld [vmem:[%s6313_s1 + $0x50] sm:$0xff] }
 0x1e3   : > { %4529 = vmatpush3.bf16.msra.mxu0 %v1299_v63 }
 0x1e4   : > { %4707 = vmatprep.subr.msk.bf16.mxu0 %vm891_vm1, %v4237_v62  ;;  %v1647_v31 = vsel %vm891_vm1, %v4241_v20, 0  ;;  %v1589_v34 = vsel %vm891_vm1, %v4240_v28, 0 }
 0x1e5   : > { %v487_v0 = vpop.trf.xlu1  ;;  %v652_v5 = vpop.trf.xlu0 }
 0x1e6   : > { %v4243_v29 = vcombine.high %v487_v0, %v487_v0  ;;  %v4242_v33 = vcombine.low %v487_v0, %v487_v0 }
 0x1e8   : > { %v1705_v45 = vsel %vm891_vm1, %v4242_v33, 0  ;;  %v1763_v46 = vsel %vm891_vm1, %v4243_v29, 0 }
 0x1e9   : > { %v5262_v1 = vpop.trf.xlu1  ;;  %v653_v9 = vpop.trf.xlu0 }
 0x1ea   : > { %6366 = vst [vmem:[#allocation9_spill] sm:$0xff] %v5262_v1 }
 0x1ed   : > { %v5264_v2 = vpop.trf.xlu1  ;;  %v684_v16 = vpop.trf.xlu0 }
 0x1ee   : > { %6367 = vst [vmem:[#allocation10_spill] sm:$0xff] %v5264_v2 }
 0x1f1   : > { %v604_v3 = vpop.trf.xlu1  ;;  %v685_v24 = vpop.trf.xlu0 }
 0x1f2   : > { %4506 = vmatprep.mubr.msk.bf16.mxu1 %vm884_vm2, %v604_v3 }
 0x1f5   : > { %v605_v4 = vpop.trf.xlu1  ;;  %v716_v27 = vpop.trf.xlu0 }
 0x1f6   : > { %4507 = vmatmul.mubr.msk.bf16.vlgmr.msra.gmra.mrb[4].mxu1 %vm884_vm2, %v605_v4 }
 0x1f7   : > { %4511 = vmatpush3.bf16.msra.mxu1 %v1125_v7  ;;  %4512 = vmatprep.mubr.msk.bf16.mxu1 %vm884_vm2, %v620_v49 }
 0x1f8   : > { %4704 = vmatprep.subr.msk.bf16.mxu1 %vm891_vm1, %v4234_v6 }
 0x1f9   : > { %v668_v8 = vpop.trf.xlu1  ;;  %v717_v32 = vpop.trf.xlu0 }
 0x1fa   : > { %4530 = vmatprep.mubr.msk.bf16.mxu0 %vm884_vm2, %v668_v8 }
 0x1fd   : > { %v669_v10 = vpop.trf.xlu1 }
 0x1fe   : > { %4513 = vmatmul.mubr.msk.bf16.vlgmr.msra.gmra.mrb[8].mxu1 %vm884_vm2, %v621_v53  ;;  %4531 = vmatmul.mubr.msk.bf16.vlgmr.msra.gmra.mrb[28].mxu0 %vm884_vm2, %v669_v10  ;;  %v2695_v53 = vsel %vm298_vm0, %v4245_v44, 0  ;;  %v5386_v10 = vld [vmem:[%s6313_s1 + $0x40] sm:$0xff] }
 0x1ff   : > { %4523 = vmatpush3.bf16.msra.mxu1 %v1241_v13  ;;  %4541 = vmatpush3.bf16.msra.mxu0 %v1415_v14 }
 0x200   : > { %4706 = vmatprep.subr.msk.bf16.mxu1 %vm891_vm1, %v4236_v11  ;;  %4709 = vmatprep.subr.msk.bf16.mxu0 %vm891_vm1, %v4239_v12 }
 0x201   : > { %v700_v15 = vpop.trf.xlu1  ;;  %4524 = vmatprep.mubr.msk.bf16.mxu1 %vm884_vm2, %v652_v5  ;;  %v5373_v5 = vld [vmem:[%s6313_s1 + $0x58] sm:$0xff] }
 0x202   : > { %4542 = vmatprep.mubr.msk.bf16.mxu0 %vm884_vm2, %v700_v15 }
 0x205   : > { %v701_v17 = vpop.trf.xlu1 }
 0x206   : > { %4525 = vmatmul.mubr.msk.bf16.vlgmr.msra.gmra.mrb[12].mxu1 %vm884_vm2, %v653_v9  ;;  %4543 = vmatmul.mubr.msk.bf16.vlgmr.msra.gmra.mrb[32].mxu0 %vm884_vm2, %v701_v17 }
 0x207   : > { %4535 = vmatpush3.bf16.msra.mxu1 %v1357_v21  ;;  %4553 = vmatpush3.bf16.msra.mxu0 %v1531_v23 }
 0x208   : > { %4708 = vmatprep.subr.msk.bf16.mxu1 %vm891_vm1, %v4238_v19  ;;  %4711 = vmatprep.subr.msk.bf16.mxu0 %vm891_vm1, %v4241_v20 }
 0x209   : > { %v732_v25 = vpop.trf.xlu1  ;;  %4536 = vmatprep.mubr.msk.bf16.mxu1 %vm884_vm2, %v684_v16  ;;  %v5396_v16 = vld [vmem:[%s6313_s1 + $0x48] sm:$0xff] }
 0x20a   : > { %4554 = vmatprep.mubr.msk.bf16.mxu0 %vm884_vm2, %v732_v25 }
 0x20d   : > { %v733_v26 = vpop.trf.xlu1 }
 0x20e   : > { %4537 = vmatmul.mubr.msk.bf16.vlgmr.msra.gmra.mrb[16].mxu1 %vm884_vm2, %v685_v24  ;;  %4555 = vmatmul.mubr.msk.bf16.vlgmr.msra.gmra.mrb[36].mxu0 %vm884_vm2, %v733_v26 }
 0x20f   : > { %4547 = vmatpush3.bf16.msra.mxu1 %v1473_v30  ;;  %4565 = vmatpush3.bf16.msra.mxu0 %v1647_v31 }
 0x210   : > { %4710 = vmatprep.subr.msk.bf16.mxu1 %vm891_vm1, %v4240_v28  ;;  %4713 = vmatprep.subr.msk.bf16.mxu0 %vm891_vm1, %v4243_v29  ;;  %v5420_v29 = vld [vmem:[%s6313_s1 + $0x38] sm:$0xff] }
 0x211   : > { %4548 = vmatprep.mubr.msk.bf16.mxu1 %vm884_vm2, %v716_v27  ;;  %v5413_v27 = vld [vmem:[%s6313_s1 + $0x30] sm:$0xff] }
 0x216   : > { %4549 = vmatmul.mubr.msk.bf16.vlgmr.msra.gmra.mrb[20].mxu1 %vm884_vm2, %v717_v32  ;;  %v5430_v32 = vld [vmem:[%s6313_s1 + $0x20] sm:$0xff] }
 0x217   : > { %4559 = vmatpush3.bf16.msra.mxu1 %v1589_v34  ;;  %v5438_v34 = vld [vmem:[%s6313_s1 + $0x28] sm:$0xff] }
 0x218   : > { %4712 = vmatprep.subr.msk.bf16.mxu1 %vm891_vm1, %v4242_v33 }
 0x242   : > { %v764_v39 = vpop.trf.xlu1  ;;  %v748_v40 = vpop.trf.xlu0 }
 0x243   : > { %4566 = vmatprep.mubr.msk.bf16.mxu0 %vm884_vm2, %v764_v39  ;;  %4560 = vmatprep.mubr.msk.bf16.mxu1 %vm884_vm2, %v748_v40 }
 0x246   : > { %v765_v41 = vpop.trf.xlu1  ;;  %v749_v42 = vpop.trf.xlu0 }
 0x247   : > { %4561 = vmatmul.mubr.msk.bf16.vlgmr.msra.gmra.mrb[24].mxu1 %vm884_vm2, %v749_v42  ;;  %4567 = vmatmul.mubr.msk.bf16.vlgmr.msra.gmra.mrb[40].mxu0 %vm884_vm2, %v765_v41 }
 0x248   : > { %4571 = vmatpush3.bf16.msra.mxu1 %v1705_v45  ;;  %4577 = vmatpush3.bf16.msra.mxu0 %v1763_v46 }
 0x249   : > { %4714 = vmatprep.subr.msk.bf16.mxu1 %vm298_vm0, %v4244_v43  ;;  %4715 = vmatprep.subr.msk.bf16.mxu0 %vm298_vm0, %v4245_v44 }
 0x24a   : > { %v796_v47 = vpop.trf.xlu1  ;;  %v780_v48 = vpop.trf.xlu0 }
 0x24b   : > { %4572 = vmatprep.mubr.msk.bf16.mxu1 %vm884_vm2, %v780_v48  ;;  %4578 = vmatprep.mubr.msk.bf16.mxu0 %vm884_vm2, %v796_v47 }
 0x24e   : > { %v797_v18 = vpop.trf.xlu1  ;;  %v781_v49 = vpop.trf.xlu0 }
 0x24f   : > { %4573 = vmatmul.mubr.msk.bf16.vlgmr.msra.gmra.mrb[28].mxu1 %vm884_vm2, %v781_v49  ;;  %4579 = vmatmul.mubr.msk.bf16.vlgmr.msra.gmra.mrb[44].mxu0 %vm884_vm2, %v797_v18  ;;  %v5457_v18 = vld [vmem:[%s6313_s1 + $0x70] sm:$0xff]  ;;  %v5462_v49 = vld [vmem:[%s6313_s1 + $0x60] sm:$0xff] }
 0x251   : > { %4583 = vmatpush3.bf16.xpose.msra.mxu1 %v2637_v52  ;;  %4589 = vmatpush3.bf16.xpose.msra.mxu0 %v2695_v53  ;;  %v5467_v53 = vld [vmem:[%s6313_s1 + $0x78] sm:$0xff] }
 0x252   : > { %4716 = vmatprep.subr.msk.bf16.mxu1 %vm298_vm0, %v5322_v50  ;;  %4717 = vmatprep.subr.msk.bf16.mxu0 %vm298_vm0, %v5326_v51 }
 0x2a1   : > { %v4490_v55 = vpop.f32.mrb[16].mxu0 }
 0x2a2   : > { %v5350_v57 = vadd.f32 %v4490_v55, %v5337_v54  ;;  %v929_v58 = vpop.f32.mrb[17].mxu0 }
 0x2a3   : > { %v4491_v59 = vpop.f32.mrb[18].mxu0  ;;  %v5363_v62 = vadd.f32 %v5342_v22, %v929_v58 }
 0x2a4   : > { %v5366_v63 = vadd.f32 %v4491_v59, %v5347_v56  ;;  %v932_v0 = vpop.f32.mrb[19].mxu0  ;;  %v1900_v3 = vsel %vm298_vm0, %v5350_v57, -inf  ;;  %v5475_v59 = vld [vmem:[%s6313_s1 + $0x68] sm:$0xff] }
 0x2a5   : > { %1901 = vmax.xlane.f32.xlu0 %v1900_v3  ;;  %v4502_v4 = vpop.f32.mrb[0].mxu1  ;;  %v5376_v6 = vadd.f32 %v5355_v60, %v932_v0  ;;  %v1894_v12 = vsel %vm298_vm0, %v5363_v62, -inf }
 0x2a6   : > { %v1903_v7 = vsel %vm298_vm0, %v5366_v63, -inf  ;;  %v5381_v8 = vadd.f32 %v4502_v4, %v5360_v61  ;;  %v1045_v9 = vpop.f32.mrb[1].mxu1 }
 0x2a7   : > { %1904 = vmax.xlane.f32.xlu1 %v1903_v7  ;;  %v4503_v11 = vpop.f32.mrb[2].mxu1  ;;  %v5399_v19 = vadd.f32 %v5386_v10, %v1045_v9  ;;  %v1897_v20 = vsel %vm298_vm0, %v5376_v6, -inf }
 0x2a8   : > { %v5391_v13 = vadd.f32 %v4503_v11, %v5373_v5  ;;  %v1048_v14 = vpop.f32.mrb[3].mxu1  ;;  %v1924_v21 = vsel %vm298_vm0, %v5381_v8, -inf }
 0x2a9   : > { %v4496_v15 = vpop.f32.mrb[20].mxu0  ;;  %1895 = vmax.xlane.f32.xlu0 %v1894_v12  ;;  %v5408_v26 = vadd.f32 %v5396_v16, %v1048_v14  ;;  %v1918_v28 = vsel %vm298_vm0, %v5399_v19, -inf }
 0x2aa   : > { %v987_v17 = vpop.f32.mrb[21].mxu0  ;;  %v1927_v25 = vsel %vm298_vm0, %v5391_v13, -inf  ;;  %v5423_v30 = vadd.f32 %v4496_v15, %v5413_v27 }
 0x2ab   : > { %v4497_v23 = vpop.f32.mrb[22].mxu0  ;;  %1898 = vmax.xlane.f32.xlu1 %v1897_v20  ;;  %v1921_v31 = vsel %vm298_vm0, %v5408_v26, -inf  ;;  %v5441_v39 = vadd.f32 %v5430_v32, %v987_v17 }
 0x2ac   : > { %v990_v24 = vpop.f32.mrb[23].mxu0  ;;  %v5433_v33 = vadd.f32 %v4497_v23, %v5420_v29  ;;  %v1912_v40 = vsel %vm298_vm0, %v5423_v30, -inf }
 0x2ad   : > { %1925 = vmax.xlane.f32.xlu0 %v1924_v21  ;;  %v5446_v42 = vadd.f32 %v5438_v34, %v990_v24  ;;  %v1906_v46 = vsel %vm298_vm0, %v5441_v39, -inf }
 0x2ae   : > { %v1915_v43 = vsel %vm298_vm0, %v5433_v33, -inf }
 0x2af   : > { %1928 = vmax.xlane.f32.xlu1 %v1927_v25  ;;  %v1909_v48 = vsel %vm298_vm0, %v5446_v42, -inf }
 0x2b1   : > { %1919 = vmax.xlane.f32.xlu0 %v1918_v28 }
 0x2b3   : > { %1922 = vmax.xlane.f32.xlu1 %v1921_v31 }
 0x2b5   : > { %1913 = vmax.xlane.f32.xlu0 %v1912_v40  ;;  %v4520_v41 = vpop.f32.mrb[24].mxu0 }
 0x2b6   : > { %v1219_v44 = vpop.f32.mrb[25].mxu0  ;;  %v5493_v15 = vadd.f32 %v4520_v41, %v5413_v27 }
 0x2b7   : > { %1916 = vmax.xlane.f32.xlu1 %v1915_v43  ;;  %v4521_v45 = vpop.f32.mrb[26].mxu0  ;;  %v5501_v25 = vadd.f32 %v5430_v32, %v1219_v44 }
 0x2b8   : > { %v1222_v47 = vpop.f32.mrb[27].mxu0  ;;  %v5498_v20 = vadd.f32 %v4521_v45, %v5420_v29  ;;  %v1960_v28 = vsel %vm298_vm0, %v5493_v15, -inf }
 0x2b9   : > { %1907 = vmax.xlane.f32.xlu0 %v1906_v46  ;;  %v5508_v45 = vadd.f32 %v5438_v34, %v1222_v47  ;;  %v1954_v44 = vsel %vm298_vm0, %v5501_v25, -inf }
 0x2ba   : > { %v1963_v46 = vsel %vm298_vm0, %v5498_v20, -inf }
 0x2bb   : > { %1910 = vmax.xlane.f32.xlu1 %v1909_v48 }
 0x2c9   : > { %v4508_v52 = vpop.f32.mrb[4].mxu1 }
 0x2ca   : > { %v5470_v55 = vadd.f32 %v4508_v52, %v5457_v18  ;;  %v1103_v58 = vpop.f32.mrb[5].mxu1 }
 0x2cb   : > { %v5478_v0 = vadd.f32 %v5462_v49, %v1103_v58  ;;  %v4509_v3 = vpop.f32.mrb[6].mxu1  ;;  %v1957_v58 = vsel %vm298_vm0, %v5508_v45, -inf }
 0x2cc   : > { %v5481_v4 = vadd.f32 %v4509_v3, %v5467_v53  ;;  %v1936_v7 = vsel %vm298_vm0, %v5470_v55, -inf  ;;  %v1106_v9 = vpop.f32.mrb[7].mxu1 }
 0x2cd   : > { %1937 = vmax.xlane.f32.xlu0 %v1936_v7  ;;  %v5486_v11 = vadd.f32 %v5475_v59, %v1106_v9  ;;  %v1930_v14 = vsel %vm298_vm0, %v5478_v0, -inf }
 0x2ce   : > { %v1939_v12 = vsel %vm298_vm0, %v5481_v4, -inf }
 0x2cf   : > { %1940 = vmax.xlane.f32.xlu1 %v1939_v12  ;;  %v1933_v17 = vsel %vm298_vm0, %v5486_v11, -inf }
 0x2d1   : > { %1931 = vmax.xlane.f32.xlu0 %v1930_v14  ;;  %v4514_v21 = vpop.f32.mrb[8].mxu1  ;;  %v4532_v23 = vpop.f32.mrb[28].mxu0 }
 0x2d2   : > { %v1161_v24 = vpop.f32.mrb[9].mxu1  ;;  %v1335_v31 = vpop.f32.mrb[29].mxu0  ;;  %v5513_v52 = vadd.f32 %v4514_v21, %v5337_v54  ;;  %v5531_v1 = vadd.f32 %v4532_v23, %v5457_v18 }
 0x2d3   : > { %1934 = vmax.xlane.f32.xlu1 %v1933_v17  ;;  %v4515_v40 = vpop.f32.mrb[10].mxu1  ;;  %v4533_v41 = vpop.f32.mrb[30].mxu0 }
 0x2d4   : > { %v1164_v43 = vpop.f32.mrb[11].mxu1  ;;  %v1338_v48 = vpop.f32.mrb[31].mxu0  ;;  %v5518_v9 = vadd.f32 %v4515_v40, %v5347_v56  ;;  %v1948_v21 = vsel %vm298_vm0, %v5513_v52, -inf  ;;  %6373 = vst [vmem:[#allocation16_spill] sm:$0xff] %v5531_v1  ;;  %v1984_v23 = vsel %vm298_vm0, %v5531_v1, -inf }
 0x2d5   : > { %1961 = vmax.xlane.f32.xlu0 %v1960_v28  ;;  %v5521_v28 = vadd.f32 %v5342_v22, %v1161_v24 }
 0x2d6   : > { %6370 = vst [vmem:[#allocation13_spill] sm:$0xff] %v5518_v9  ;;  %v1951_v40 = vsel %vm298_vm0, %v5518_v9, -inf }
 0x2d7   : > { %1964 = vmax.xlane.f32.xlu1 %v1963_v46  ;;  %6371 = vst [vmem:[#allocation14_spill] sm:$0xff] %v5521_v28  ;;  %v1942_v24 = vsel %vm298_vm0, %v5521_v28, -inf }
 0x2d9   : > { %1955 = vmax.xlane.f32.xlu0 %v1954_v44  ;;  %v4526_v3 = vpop.f32.mrb[12].mxu1  ;;  %v4544_v7 = vpop.f32.mrb[32].mxu0  ;;  %v5526_v44 = vadd.f32 %v5355_v60, %v1164_v43 }
 0x2da   : > { %v1277_v47 = vpop.f32.mrb[13].mxu1  ;;  %v1451_v12 = vpop.f32.mrb[33].mxu0  ;;  %v5553_v28 = vadd.f32 %v4526_v3, %v5360_v61 }
 0x2db   : > { %1958 = vmax.xlane.f32.xlu1 %v1957_v58  ;;  %v4527_v14 = vpop.f32.mrb[14].mxu1  ;;  %v4545_v17 = vpop.f32.mrb[34].mxu0  ;;  %6372 = vst [vmem:[#allocation15_spill] sm:$0xff] %v5526_v44  ;;  %v5536_v58 = vadd.f32 %v4533_v41, %v5467_v53  ;;  %v1945_v43 = vsel %vm298_vm0, %v5526_v44, -inf }
 0x2dc   : > { %v1280_v46 = vpop.f32.mrb[15].mxu1  ;;  %v1454_v2 = vpop.f32.mrb[35].mxu0  ;;  %v5558_v1 = vadd.f32 %v4527_v14, %v5373_v5  ;;  %v5571_v14 = vadd.f32 %v4544_v7, %v5413_v27 }
 0x2dd   : > { %1949 = vmax.xlane.f32.xlu0 %v1948_v21  ;;  %6374 = vst [vmem:[#allocation17_spill] sm:$0xff] %v5536_v58  ;;  %v5539_v21 = vadd.f32 %v5462_v49, %v1335_v31  ;;  %v1987_v41 = vsel %vm298_vm0, %v5536_v58, -inf  ;;  %v5586_v7 = vadd.f32 %v5438_v34, %v1454_v2 }
 0x2de   : > { %6377 = vst [vmem:[#allocation20_spill] sm:$0xff] %v5558_v1  ;;  %v1975_v3 = vsel %vm298_vm0, %v5558_v1, -inf  ;;  %v5581_v1 = vadd.f32 %v5430_v32, %v1451_v12 }
 0x2df   : > { %1952 = vmax.xlane.f32.xlu1 %v1951_v40  ;;  %6375 = vst [vmem:[#allocation18_spill] sm:$0xff] %v5539_v21  ;;  %v1978_v44 = vsel %vm298_vm0, %v5539_v21, -inf  ;;  %v2005_v12 = vsel %vm298_vm0, %v5586_v7, -inf }
 0x2e1   : > { %1943 = vmax.xlane.f32.xlu0 %v1942_v24  ;;  %v4538_v38 = vpop.f32.mrb[16].mxu1  ;;  %v4556_v36 = vpop.f32.mrb[36].mxu0  ;;  %v5548_v24 = vadd.f32 %v5475_v59, %v1338_v48  ;;  %v5561_v48 = vadd.f32 %v5386_v10, %v1277_v47 }
 0x2e2   : > { %v1393_v51 = vpop.f32.mrb[17].mxu1  ;;  %v1567_v40 = vpop.f32.mrb[37].mxu0 }
 0x2e3   : > { %1946 = vmax.xlane.f32.xlu1 %v1945_v43  ;;  %v4539_v37 = vpop.f32.mrb[18].mxu1  ;;  %v4557_v50 = vpop.f32.mrb[38].mxu0  ;;  %6376 = vst [vmem:[#allocation19_spill] sm:$0xff] %v5548_v24  ;;  %v1981_v43 = vsel %vm298_vm0, %v5548_v24, -inf  ;;  %v1966_v47 = vsel %vm298_vm0, %v5561_v48, -inf  ;;  %v5601_v2 = vadd.f32 %v5342_v22, %v1393_v51 }
 0x2e4   : > { %v1396_v35 = vpop.f32.mrb[19].mxu1  ;;  %v1570_v31 = vpop.f32.mrb[39].mxu0  ;;  %v5616_v51 = vadd.f32 %v4557_v50, %v5467_v53 }
 0x2e5   : > { %1985 = vmax.xlane.f32.xlu0 %v1984_v23  ;;  %v1972_v23 = vsel %vm298_vm0, %v5553_v28, -inf }
 0x2e7   : > { %1988 = vmax.xlane.f32.xlu1 %v1987_v41  ;;  %v5568_v41 = vadd.f32 %v5396_v16, %v1280_v46  ;;  %v2008_v46 = vsel %vm298_vm0, %v5571_v14, -inf }
 0x2e9   : > { %1979 = vmax.xlane.f32.xlu0 %v1978_v44  ;;  %v4550_v58 = vpop.f32.mrb[20].mxu1  ;;  %v5576_v44 = vadd.f32 %v4545_v17, %v5420_v29  ;;  %v2002_v17 = vsel %vm298_vm0, %v5581_v1, -inf }
 0x2ea   : > { %v1509_v9 = vpop.f32.mrb[21].mxu1 }
 0x2eb   : > { %1982 = vmax.xlane.f32.xlu1 %v1981_v43  ;;  %v4551_v21 = vpop.f32.mrb[22].mxu1  ;;  %v1969_v43 = vsel %vm298_vm0, %v5568_v41, -inf }
 0x2ec   : > { %v1512_v24 = vpop.f32.mrb[23].mxu1 }
 0x2ed   : > { %1973 = vmax.xlane.f32.xlu0 %v1972_v23  ;;  %v2011_v23 = vsel %vm298_vm0, %v5576_v44, -inf }
 0x2ef   : > { %1976 = vmax.xlane.f32.xlu1 %v1975_v3  ;;  %v5593_v3 = vadd.f32 %v4538_v38, %v5337_v54  ;;  %v5608_v38 = vadd.f32 %v5355_v60, %v1396_v35 }
 0x2f1   : > { %1967 = vmax.xlane.f32.xlu0 %v1966_v47  ;;  %v5598_v47 = vadd.f32 %v4539_v37, %v5347_v56  ;;  %v1990_v37 = vsel %vm298_vm0, %v5601_v2, -inf }
 0x2f3   : > { %1970 = vmax.xlane.f32.xlu1 %v1969_v43  ;;  %v1996_v43 = vsel %vm298_vm0, %v5593_v3, -inf }
 0x2f5   : > { %2009 = vmax.xlane.f32.xlu0 %v2008_v46  ;;  %v1999_v46 = vsel %vm298_vm0, %v5598_v47, -inf }
 0x2f7   : > { %2012 = vmax.xlane.f32.xlu1 %v2011_v23  ;;  %v5611_v23 = vadd.f32 %v4556_v36, %v5457_v18  ;;  %v5626_v36 = vadd.f32 %v5475_v59, %v1570_v31  ;;  %v5641_v31 = vadd.f32 %v5386_v10, %v1509_v9 }
 0x2f9   : > { %2003 = vmax.xlane.f32.xlu0 %v2002_v17  ;;  %v1993_v17 = vsel %vm298_vm0, %v5608_v38, -inf  ;;  %v2032_v35 = vsel %vm298_vm0, %v5611_v23, -inf  ;;  %6378 = vst [vmem:[#allocation21_spill] sm:$0xff] %v5626_v36  ;;  %6381 = vst [vmem:[#allocation24_spill] sm:$0xff] %v5641_v31 }
 0x2fb   : > { %2006 = vmax.xlane.f32.xlu1 %v2005_v12  ;;  %v5621_v12 = vadd.f32 %v5462_v49, %v1567_v40  ;;  %v2029_v40 = vsel %vm298_vm0, %v5626_v36, -inf }
 0x2fd   : > { %1997 = vmax.xlane.f32.xlu0 %v1996_v43  ;;  %v2035_v43 = vsel %vm298_vm0, %v5616_v51, -inf  ;;  %v2026_v50 = vsel %vm298_vm0, %v5621_v12, -inf }
 0x2ff   : > { %2000 = vmax.xlane.f32.xlu1 %v1999_v46  ;;  %v5633_v46 = vadd.f32 %v4550_v58, %v5360_v61  ;;  %v5648_v58 = vadd.f32 %v5396_v16, %v1512_v24 }
 0x301   : > { %1991 = vmax.xlane.f32.xlu0 %v1990_v37  ;;  %6379 = vst [vmem:[#allocation22_spill] sm:$0xff] %v5633_v46  ;;  %v5638_v37 = vadd.f32 %v4551_v21, %v5373_v5  ;;  %6382 = vst [vmem:[#allocation25_spill] sm:$0xff] %v5648_v58  ;;  %v2017_v21 = vsel %vm298_vm0, %v5648_v58, -inf }
 0x303   : > { %1994 = vmax.xlane.f32.xlu1 %v1993_v17  ;;  %6380 = vst [vmem:[#allocation23_spill] sm:$0xff] %v5638_v37  ;;  %v2020_v17 = vsel %vm298_vm0, %v5633_v46, -inf }
 0x305   : > { %2033 = vmax.xlane.f32.xlu0 %v2032_v35  ;;  %v2023_v35 = vsel %vm298_vm0, %v5638_v37, -inf }
 0x307   : > { %2036 = vmax.xlane.f32.xlu1 %v2035_v43  ;;  %v2014_v43 = vsel %vm298_vm0, %v5641_v31, -inf }
 0x309   : > { %2027 = vmax.xlane.f32.xlu0 %v2026_v50 }
 0x30b   : > { %2030 = vmax.xlane.f32.xlu1 %v2029_v40 }
 0x30d   : > { %2021 = vmax.xlane.f32.xlu0 %v2020_v17 }
 0x30f   : > { %2024 = vmax.xlane.f32.xlu1 %v2023_v35 }
 0x311   : > { %2015 = vmax.xlane.f32.xlu0 %v2014_v43 }
 0x313   : > { %2018 = vmax.xlane.f32.xlu1 %v2017_v21 }
 0x31a   : > { %v4568_v9 = vpop.f32.mrb[40].mxu0  ;;  %v4562_v50 = vpop.f32.mrb[24].mxu1 }
 0x31b   : > { %v5655_v40 = vadd.f32 %v4568_v9, %v5413_v27  ;;  %v1683_v46 = vpop.f32.mrb[41].mxu0  ;;  %v1625_v37 = vpop.f32.mrb[25].mxu1  ;;  %v5669_v27 = vadd.f32 %v4562_v50, %v5337_v54 }
 0x31c   : > { %v4569_v36 = vpop.f32.mrb[42].mxu0  ;;  %v4563_v24 = vpop.f32.mrb[26].mxu1  ;;  %v5658_v17 = vadd.f32 %v5430_v32, %v1683_v46 }
 0x31d   : > { %v5661_v31 = vadd.f32 %v4569_v36, %v5420_v29  ;;  %v1686_v35 = vpop.f32.mrb[43].mxu0  ;;  %v2056_v43 = vsel %vm298_vm0, %v5655_v40, -inf  ;;  %v1628_v21 = vpop.f32.mrb[27].mxu1  ;;  %6385 = vst [vmem:[#allocation28_spill] sm:$0xff] %v5669_v27  ;;  %v5676_v46 = vadd.f32 %v4563_v24, %v5347_v56  ;;  %v2044_v54 = vsel %vm298_vm0, %v5669_v27, -inf }
 0x31e   : > { %6383 = vst [vmem:[#allocation26_spill] sm:$0xff] %v5658_v17  ;;  %2057 = vmax.xlane.f32.xlu0 %v2056_v43  ;;  %v5666_v58 = vadd.f32 %v5438_v34, %v1686_v35  ;;  %v2050_v29 = vsel %vm298_vm0, %v5658_v17, -inf  ;;  %v5686_v56 = vadd.f32 %v5355_v60, %v1628_v21 }
 0x31f   : > { %6384 = vst [vmem:[#allocation27_spill] sm:$0xff] %v5661_v31  ;;  %v2059_v9 = vsel %vm298_vm0, %v5661_v31, -inf  ;;  %v5683_v31 = vadd.f32 %v5342_v22, %v1625_v37  ;;  %v2047_v27 = vsel %vm298_vm0, %v5676_v46, -inf }
 0x320   : > { %2060 = vmax.xlane.f32.xlu1 %v2059_v9  ;;  %v2053_v34 = vsel %vm298_vm0, %v5666_v58, -inf  ;;  %v2041_v37 = vsel %vm298_vm0, %v5686_v56, -inf }
 0x322   : > { %2051 = vmax.xlane.f32.xlu0 %v2050_v29  ;;  %v4580_v32 = vpop.f32.mrb[44].mxu0  ;;  %v4574_v36 = vpop.f32.mrb[28].mxu1 }
 0x323   : > { %v1799_v50 = vpop.f32.mrb[45].mxu0  ;;  %v1741_v35 = vpop.f32.mrb[29].mxu1  ;;  %v5689_v24 = vadd.f32 %v4580_v32, %v5457_v18 }
 0x324   : > { %2054 = vmax.xlane.f32.xlu1 %v2053_v34  ;;  %v4581_v43 = vpop.f32.mrb[46].mxu0  ;;  %v4575_v9 = vpop.f32.mrb[30].mxu1  ;;  %v2038_v34 = vsel %vm298_vm0, %v5683_v31, -inf  ;;  %v5703_v18 = vadd.f32 %v5462_v49, %v1799_v50  ;;  %v5724_v50 = vadd.f32 %v5386_v10, %v1741_v35 }
 0x325   : > { %v1802_v29 = vpop.f32.mrb[47].mxu0  ;;  %v1744_v17 = vpop.f32.mrb[31].mxu1  ;;  %v5696_v22 = vadd.f32 %v4581_v43, %v5467_v53  ;;  %v2080_v60 = vsel %vm298_vm0, %v5689_v24, -inf  ;;  %v5716_v43 = vadd.f32 %v4575_v9, %v5373_v5 }
 0x326   : > { %2045 = vmax.xlane.f32.xlu0 %v2044_v54  ;;  %v5706_v21 = vadd.f32 %v5475_v59, %v1802_v29  ;;  %v2074_v32 = vsel %vm298_vm0, %v5703_v18, -inf }
 0x327   : > { %v2083_v53 = vsel %vm298_vm0, %v5696_v22, -inf }
 0x328   : > { %2048 = vmax.xlane.f32.xlu1 %v2047_v27  ;;  %v5709_v27 = vadd.f32 %v4574_v36, %v5360_v61  ;;  %v2077_v59 = vsel %vm298_vm0, %v5706_v21, -inf }
 0x32a   : > { %2039 = vmax.xlane.f32.xlu0 %v2038_v34  ;;  %v2068_v61 = vsel %vm298_vm0, %v5709_v27, -inf }
 0x32c   : > { %2042 = vmax.xlane.f32.xlu1 %v2041_v37  ;;  %v5728_v37 = vadd.f32 %v5396_v16, %v1744_v17 }
 0x32e   : > { %2081 = vmax.xlane.f32.xlu0 %v2080_v60  ;;  %v2071_v60 = vsel %vm298_vm0, %v5716_v43, -inf }
 0x330   : > { %2084 = vmax.xlane.f32.xlu1 %v2083_v53 }
 0x332   : > { %2075 = vmax.xlane.f32.xlu0 %v2074_v32  ;;  %v1902_v54 = vpop.xlane.xlu0 %1901 }
 0x333   : > { %v2088_v49 = vsub.f32 %v5350_v57, %v1902_v54 }
 0x334   : > { %v1905_v36 = vpop.xlane.xlu1 %1904  ;;  %2078 = vmax.xlane.f32.xlu1 %v2077_v59 }
 0x335   : > { %v2154_v29 = vmul.f32 1.442695, %v2088_v49  ;;  %v2089_v34 = vsub.f32 %v5366_v63, %v1905_v36  ;;  %v2062_v63 = vsel %vm298_vm0, %v5724_v50, -inf }
 0x336   : > { %2069 = vmax.xlane.f32.xlu0 %v2068_v61  ;;  %v1896_v5 = vpop.xlane.xlu0 %1895 }
 0x337   : > { %4776 = vpow2.f32 %v2154_v29  ;;  %v2156_v57 = vmul.f32 1.442695, %v2089_v34  ;;  %v2086_v9 = vsub.f32 %v5363_v62, %v1896_v5  ;;  %v2065_v62 = vsel %vm298_vm0, %v5728_v37, -inf }
 0x338   : > { %v1899_v53 = vpop.xlane.xlu1 %1898  ;;  %2072 = vmax.xlane.f32.xlu1 %v2071_v60 }
 0x339   : > { %4778 = vpow2.f32 %v2156_v57  ;;  %v2150_v10 = vmul.f32 1.442695, %v2086_v9  ;;  %v2087_v35 = vsub.f32 %v5376_v6, %v1899_v53 }
 0x33a   : > { %2063 = vmax.xlane.f32.xlu0 %v2062_v63  ;;  %v1926_v16 = vpop.xlane.xlu0 %1925 }
 0x33b   : > { %4780 = vpow2.f32 %v2150_v10  ;;  %v2152_v17 = vmul.f32 1.442695, %v2087_v35  ;;  %v2096_v32 = vsub.f32 %v5381_v8, %v1926_v16 }
 0x33c   : > { %v1929_v54 = vpop.xlane.xlu1 %1928  ;;  %2066 = vmax.xlane.f32.xlu1 %v2065_v62 }
 0x33d   : > { %4782 = vpow2.f32 %v2152_v17  ;;  %v2170_v49 = vmul.f32 1.442695, %v2096_v32  ;;  %v2097_v59 = vsub.f32 %v5391_v13, %v1929_v54 }
 0x33e   : > { %v1920_v61 = vpop.xlane.xlu0 %1919 }
 0x33f   : > { %4784 = vpow2.f32 %v2170_v49  ;;  %v2172_v6 = vmul.f32 1.442695, %v2097_v59  ;;  %v2094_v36 = vsub.f32 %v5399_v19, %v1920_v61 }
 0x340   : > { %v1923_v29 = vpop.xlane.xlu1 %1922 }
 0x341   : > { %v5741_v34 = vpop.eup %4776  ;;  %4786 = vpow2.f32 %v2172_v6  ;;  %v2166_v5 = vmul.f32 1.442695, %v2094_v36  ;;  %v2095_v8 = vsub.f32 %v5408_v26, %v1923_v29 }
 0x342   : > { %v1914_v57 = vpop.xlane.xlu0 %1913  ;;  %v2284_v9 = vsel %vm298_vm0, %v5741_v34, 0.0 }
 0x343   : > { %v5746_v60 = vpop.eup %4778  ;;  %4788 = vpow2.f32 %v2166_v5  ;;  %v2168_v13 = vmul.f32 1.442695, %v2095_v8  ;;  %v2092_v53 = vsub.f32 %v5423_v30, %v1914_v57  ;;  %2285 = vadd.xlane.f32.xlu0 %v2284_v9 }
 0x344   : > { %v1917_v10 = vpop.xlane.xlu1 %1916  ;;  %v2287_v19 = vsel %vm298_vm0, %v5746_v60, 0.0 }
 0x345   : > { %v5751_v35 = vpop.eup %4780  ;;  %4790 = vpow2.f32 %v2168_v13  ;;  %v2162_v63 = vmul.f32 1.442695, %v2092_v53  ;;  %v2093_v26 = vsub.f32 %v5433_v33, %v1917_v10  ;;  %2288 = vadd.xlane.f32.xlu1 %v2287_v19 }
 0x346   : > { %v1908_v16 = vpop.xlane.xlu0 %1907  ;;  %v2278_v17 = vsel %vm298_vm0, %v5751_v35, 0.0 }
 0x347   : > { %v5756_v32 = vpop.eup %4782  ;;  %4792 = vpow2.f32 %v2162_v63  ;;  %v2164_v30 = vmul.f32 1.442695, %v2093_v26  ;;  %v2090_v62 = vsub.f32 %v5441_v39, %v1908_v16  ;;  %2279 = vadd.xlane.f32.xlu0 %v2278_v17 }
 0x348   : > { %v1911_v54 = vpop.xlane.xlu1 %1910  ;;  %v2281_v49 = vsel %vm298_vm0, %v5756_v32, 0.0 }
 0x349   : > { %v5761_v59 = vpop.eup %4784  ;;  %4794 = vpow2.f32 %v2164_v30  ;;  %v2158_v33 = vmul.f32 1.442695, %v2090_v62  ;;  %v2091_v61 = vsub.f32 %v5446_v42, %v1911_v54  ;;  %2282 = vadd.xlane.f32.xlu1 %v2281_v49 }
 0x34a   : > { %v2308_v6 = vsel %vm298_vm0, %v5761_v59, 0.0 }
 0x34b   : > { %v5766_v36 = vpop.eup %4786  ;;  %4796 = vpow2.f32 %v2158_v33  ;;  %v2160_v29 = vmul.f32 1.442695, %v2091_v61  ;;  %2309 = vadd.xlane.f32.xlu0 %v2308_v6 }
 0x34c   : > { %v2311_v39 = vsel %vm298_vm0, %v5766_v36, 0.0 }
 0x34d   : > { %v5770_v5 = vpop.eup %4788  ;;  %4798 = vpow2.f32 %v2160_v29  ;;  %2312 = vadd.xlane.f32.xlu1 %v2311_v39 }
 0x34e   : > { %v2302_v8 = vsel %vm298_vm0, %v5770_v5, 0.0 }
 0x34f   : > { %v5774_v42 = vpop.eup %4790  ;;  %2303 = vadd.xlane.f32.xlu0 %v2302_v8 }
 0x350   : > { %v2305_v57 = vsel %vm298_vm0, %v5774_v42, 0.0 }
 0x351   : > { %v5778_v9 = vpop.eup %4792  ;;  %2306 = vadd.xlane.f32.xlu1 %v2305_v57 }
 0x352   : > { %v2296_v13 = vsel %vm298_vm0, %v5778_v9, 0.0 }
 0x353   : > { %v5782_v53 = vpop.eup %4794  ;;  %2297 = vadd.xlane.f32.xlu0 %v2296_v13 }
 0x354   : > { %v2299_v10 = vsel %vm298_vm0, %v5782_v53, 0.0 }
 0x355   : > { %v5786_v19 = vpop.eup %4796  ;;  %2300 = vadd.xlane.f32.xlu1 %v2299_v10 }
 0x356   : > { %v2290_v63 = vsel %vm298_vm0, %v5786_v19, 0.0 }
 0x357   : > { %v5790_v26 = vpop.eup %4798  ;;  %2291 = vadd.xlane.f32.xlu0 %v2290_v63 }
 0x358   : > { %v2293_v16 = vsel %vm298_vm0, %v5790_v26, 0.0 }
 0x359   : > { %2294 = vadd.xlane.f32.xlu1 %v2293_v16 }
 0x35a   : > { %v1938_v17 = vpop.xlane.xlu0 %1937 }
 0x35b   : > { %v2100_v30 = vsub.f32 %v5470_v55, %v1938_v17 }
 0x35c   : > { %v1941_v62 = vpop.xlane.xlu1 %1940 }
 0x35d   : > { %v2178_v54 = vmul.f32 1.442695, %v2100_v30  ;;  %v2101_v49 = vsub.f32 %v5481_v4, %v1941_v62 }
 0x35e   : > { %v1932_v33 = vpop.xlane.xlu0 %1931 }
 0x35f   : > { %4800 = vpow2.f32 %v2178_v54  ;;  %v2180_v61 = vmul.f32 1.442695, %v2101_v49  ;;  %v2098_v6 = vsub.f32 %v5478_v0, %v1932_v33 }
 0x360   : > { %v1935_v29 = vpop.xlane.xlu1 %1934 }
 0x361   : > { %4802 = vpow2.f32 %v2180_v61  ;;  %v2174_v39 = vmul.f32 1.442695, %v2098_v6  ;;  %v2099_v8 = vsub.f32 %v5486_v11, %v1935_v29 }
 0x362   : > { %v1962_v57 = vpop.xlane.xlu0 %1961 }
 0x363   : > { %4804 = vpow2.f32 %v2174_v39  ;;  %v2176_v13 = vmul.f32 1.442695, %v2099_v8  ;;  %v2108_v10 = vsub.f32 %v5493_v15, %v1962_v57 }
 0x364   : > { %v1965_v55 = vpop.xlane.xlu1 %1964 }
 0x365   : > { %4806 = vpow2.f32 %v2176_v13  ;;  %v2194_v63 = vmul.f32 1.442695, %v2108_v10  ;;  %v2109_v4 = vsub.f32 %v5498_v20, %v1965_v55  ;;  %v6387_v55 = vld [vmem:[#allocation14_spill] sm:$0xff] }
 0x366   : > { %v1956_v16 = vpop.xlane.xlu0 %1955 }
 0x367   : > { %4808 = vpow2.f32 %v2194_v63  ;;  %v2196_v17 = vmul.f32 1.442695, %v2109_v4  ;;  %v2106_v0 = vsub.f32 %v5501_v25, %v1956_v16 }
 0x368   : > { %v1959_v30 = vpop.xlane.xlu1 %1958 }
 0x369   : > { %v5801_v62 = vpop.eup %4800  ;;  %4810 = vpow2.f32 %v2196_v17  ;;  %v2190_v11 = vmul.f32 1.442695, %v2106_v0  ;;  %v2107_v54 = vsub.f32 %v5508_v45, %v1959_v30  ;;  %v6386_v45 = vld [vmem:[#allocation13_spill] sm:$0xff]  ;;  %v6388_v30 = vld [vmem:[#allocation15_spill] sm:$0xff] }
 0x36a   : > { %v1950_v49 = vpop.xlane.xlu0 %1949  ;;  %v2320_v15 = vsel %vm298_vm0, %v5801_v62, 0.0 }
 0x36b   : > { %v5806_v33 = vpop.eup %4802  ;;  %4812 = vpow2.f32 %v2190_v11  ;;  %v2192_v20 = vmul.f32 1.442695, %v2107_v54  ;;  %v2104_v61 = vsub.f32 %v5513_v52, %v1950_v49  ;;  %2321 = vadd.xlane.f32.xlu0 %v2320_v15 }
 0x36c   : > { %v1953_v6 = vpop.xlane.xlu1 %1952  ;;  %v2323_v25 = vsel %vm298_vm0, %v5806_v33, 0.0 }
 0x36d   : > { %v5811_v29 = vpop.eup %4804  ;;  %4814 = vpow2.f32 %v2192_v20  ;;  %v2186_v39 = vmul.f32 1.442695, %v2104_v61  ;;  %v2105_v8 = vsub.f32 %v6386_v45, %v1953_v6  ;;  %2324 = vadd.xlane.f32.xlu1 %v2323_v25  ;;  %v6389_v61 = vld [vmem:[#allocation16_spill] sm:$0xff] }
 0x36e   : > { %v1944_v57 = vpop.xlane.xlu0 %1943  ;;  %v2314_v13 = vsel %vm298_vm0, %v5811_v29, 0.0 }
 0x36f   : > { %v5816_v10 = vpop.eup %4806  ;;  %4816 = vpow2.f32 %v2186_v39  ;;  %v2188_v52 = vmul.f32 1.442695, %v2105_v8  ;;  %v2102_v63 = vsub.f32 %v6387_v55, %v1944_v57  ;;  %2315 = vadd.xlane.f32.xlu0 %v2314_v13  ;;  %v6390_v57 = vld [vmem:[#allocation17_spill] sm:$0xff] }
 0x370   : > { %v1947_v4 = vpop.xlane.xlu1 %1946  ;;  %v2317_v16 = vsel %vm298_vm0, %v5816_v10, 0.0 }
 0x371   : > { %v5821_v17 = vpop.eup %4808  ;;  %4818 = vpow2.f32 %v2188_v52  ;;  %v2182_v0 = vmul.f32 1.442695, %v2102_v63  ;;  %v2103_v11 = vsub.f32 %v6388_v30, %v1947_v4  ;;  %2318 = vadd.xlane.f32.xlu1 %v2317_v16  ;;  %v6391_v16 = vld [vmem:[#allocation18_spill] sm:$0xff] }
 0x372   : > { %v1986_v54 = vpop.xlane.xlu0 %1985  ;;  %v2344_v49 = vsel %vm298_vm0, %v5821_v17, 0.0 }
 0x373   : > { %v5826_v15 = vpop.eup %4810  ;;  %4820 = vpow2.f32 %v2182_v0  ;;  %v2184_v20 = vmul.f32 1.442695, %v2103_v11  ;;  %v2116_v6 = vsub.f32 %v6389_v61, %v1986_v54  ;;  %2345 = vadd.xlane.f32.xlu0 %v2344_v49 }
 0x374   : > { %v1989_v25 = vpop.xlane.xlu1 %1988  ;;  %v2347_v39 = vsel %vm298_vm0, %v5826_v15, 0.0 }
 0x375   : > { %v5831_v45 = vpop.eup %4812  ;;  %4822 = vpow2.f32 %v2184_v20  ;;  %v2210_v8 = vmul.f32 1.442695, %v2116_v6  ;;  %v2117_v13 = vsub.f32 %v6390_v57, %v1989_v25  ;;  %2348 = vadd.xlane.f32.xlu1 %v2347_v39  ;;  %v6392_v20 = vld [vmem:[#allocation19_spill] sm:$0xff] }
 0x376   : > { %v1980_v52 = vpop.xlane.xlu0 %1979  ;;  %v2338_v55 = vsel %vm298_vm0, %v5831_v45, 0.0 }
 0x377   : > { %v5836_v63 = vpop.eup %4814  ;;  %4824 = vpow2.f32 %v2210_v8  ;;  %v2212_v4 = vmul.f32 1.442695, %v2117_v13  ;;  %v2114_v0 = vsub.f32 %v6391_v16, %v1980_v52  ;;  %2339 = vadd.xlane.f32.xlu0 %v2338_v55  ;;  %v6393_v16 = vld [vmem:[#allocation20_spill] sm:$0xff] }
 0x378   : > { %v1983_v30 = vpop.xlane.xlu1 %1982  ;;  %v2341_v11 = vsel %vm298_vm0, %v5836_v63, 0.0 }
 0x379   : > { %v5841_v54 = vpop.eup %4816  ;;  %4826 = vpow2.f32 %v2212_v4  ;;  %v2206_v49 = vmul.f32 1.442695, %v2114_v0  ;;  %v2115_v61 = vsub.f32 %v6392_v20, %v1983_v30  ;;  %2342 = vadd.xlane.f32.xlu1 %v2341_v11 }
 0x37a   : > { %v1974_v6 = vpop.xlane.xlu0 %1973  ;;  %v2332_v25 = vsel %vm298_vm0, %v5841_v54, 0.0 }
 0x37b   : > { %v5846_v39 = vpop.eup %4818  ;;  %4828 = vpow2.f32 %v2206_v49  ;;  %v2208_v8 = vmul.f32 1.442695, %v2115_v61  ;;  %v2112_v57 = vsub.f32 %v5553_v28, %v1974_v6  ;;  %2333 = vadd.xlane.f32.xlu0 %v2332_v25 }
 0x37c   : > { %v1977_v13 = vpop.xlane.xlu1 %1976  ;;  %v2335_v52 = vsel %vm298_vm0, %v5846_v39, 0.0 }
 0x37d   : > { %v5851_v55 = vpop.eup %4820  ;;  %4830 = vpow2.f32 %v2208_v8  ;;  %v2202_v4 = vmul.f32 1.442695, %v2112_v57  ;;  %v2113_v0 = vsub.f32 %v6393_v16, %v1977_v13  ;;  %2336 = vadd.xlane.f32.xlu1 %v2335_v52 }
 0x37e   : > { %v1968_v30 = vpop.xlane.xlu0 %1967  ;;  %v2326_v11 = vsel %vm298_vm0, %v5851_v55, 0.0 }
 0x37f   : > { %v5856_v49 = vpop.eup %4822  ;;  %4832 = vpow2.f32 %v2202_v4  ;;  %v2204_v28 = vmul.f32 1.442695, %v2113_v0  ;;  %v2110_v20 = vsub.f32 %v5561_v48, %v1968_v30  ;;  %2327 = vadd.xlane.f32.xlu0 %v2326_v11 }
 0x380   : > { %v1971_v61 = vpop.xlane.xlu1 %1970  ;;  %v2329_v6 = vsel %vm298_vm0, %v5856_v49, 0.0 }
 0x381   : > { %v5861_v25 = vpop.eup %4824  ;;  %4834 = vpow2.f32 %v2204_v28  ;;  %v2198_v8 = vmul.f32 1.442695, %v2110_v20  ;;  %v2111_v57 = vsub.f32 %v5568_v41, %v1971_v61  ;;  %2330 = vadd.xlane.f32.xlu1 %v2329_v6 }
 0x382   : > { %v2010_v13 = vpop.xlane.xlu0 %2009  ;;  %v2368_v52 = vsel %vm298_vm0, %v5861_v25, 0.0 }
 0x383   : > { %v5866_v4 = vpop.eup %4826  ;;  %4836 = vpow2.f32 %v2198_v8  ;;  %v2200_v48 = vmul.f32 1.442695, %v2111_v57  ;;  %v2124_v16 = vsub.f32 %v5571_v14, %v2010_v13  ;;  %2369 = vadd.xlane.f32.xlu0 %v2368_v52 }
 0x384   : > { %v2013_v0 = vpop.xlane.xlu1 %2012  ;;  %v2371_v30 = vsel %vm298_vm0, %v5866_v4, 0.0 }
 0x385   : > { %v5871_v11 = vpop.eup %4828  ;;  %4838 = vpow2.f32 %v2200_v48  ;;  %v2226_v41 = vmul.f32 1.442695, %v2124_v16  ;;  %v2125_v28 = vsub.f32 %v5576_v44, %v2013_v0  ;;  %2372 = vadd.xlane.f32.xlu1 %v2371_v30 }
 0x386   : > { %v2004_v20 = vpop.xlane.xlu0 %2003  ;;  %v2362_v61 = vsel %vm298_vm0, %v5871_v11, 0.0 }
 0x387   : > { %v5876_v6 = vpop.eup %4830  ;;  %4840 = vpow2.f32 %v2226_v41  ;;  %v2228_v14 = vmul.f32 1.442695, %v2125_v28  ;;  %v2122_v8 = vsub.f32 %v5581_v1, %v2004_v20  ;;  %2363 = vadd.xlane.f32.xlu0 %v2362_v61 }
 0x388   : > { %v2007_v57 = vpop.xlane.xlu1 %2006  ;;  %v2365_v13 = vsel %vm298_vm0, %v5876_v6, 0.0 }
 0x389   : > { %v5881_v52 = vpop.eup %4832  ;;  %4842 = vpow2.f32 %v2228_v14  ;;  %v2222_v44 = vmul.f32 1.442695, %v2122_v8  ;;  %v2123_v48 = vsub.f32 %v5586_v7, %v2007_v57  ;;  %2366 = vadd.xlane.f32.xlu1 %v2365_v13 }
 0x38a   : > { %v1998_v16 = vpop.xlane.xlu0 %1997  ;;  %v2356_v0 = vsel %vm298_vm0, %v5881_v52, 0.0 }
 0x38b   : > { %v5886_v30 = vpop.eup %4834  ;;  %4844 = vpow2.f32 %v2222_v44  ;;  %v2224_v1 = vmul.f32 1.442695, %v2123_v48  ;;  %v2120_v41 = vsub.f32 %v5593_v3, %v1998_v16  ;;  %2357 = vadd.xlane.f32.xlu0 %v2356_v0 }
 0x38c   : > { %v2001_v28 = vpop.xlane.xlu1 %2000  ;;  %v2359_v20 = vsel %vm298_vm0, %v5886_v30, 0.0 }
 0x38d   : > { %v5891_v61 = vpop.eup %4836  ;;  %4846 = vpow2.f32 %v2224_v1  ;;  %v2218_v7 = vmul.f32 1.442695, %v2120_v41  ;;  %v2121_v14 = vsub.f32 %v5598_v47, %v2001_v28  ;;  %2360 = vadd.xlane.f32.xlu1 %v2359_v20 }
 0x38e   : > { %v1992_v8 = vpop.xlane.xlu0 %1991  ;;  %v2350_v57 = vsel %vm298_vm0, %v5891_v61, 0.0 }
 0x38f   : > { %v5896_v13 = vpop.eup %4838  ;;  %4848 = vpow2.f32 %v2218_v7  ;;  %v2220_v3 = vmul.f32 1.442695, %v2121_v14  ;;  %v2118_v44 = vsub.f32 %v5601_v2, %v1992_v8  ;;  %2351 = vadd.xlane.f32.xlu0 %v2350_v57 }
 0x390   : > { %v1995_v48 = vpop.xlane.xlu1 %1994  ;;  %v2353_v16 = vsel %vm298_vm0, %v5896_v13, 0.0 }
 0x391   : > { %v5901_v0 = vpop.eup %4840  ;;  %4850 = vpow2.f32 %v2220_v3  ;;  %v2214_v47 = vmul.f32 1.442695, %v2118_v44  ;;  %v2119_v1 = vsub.f32 %v5608_v38, %v1995_v48  ;;  %2354 = vadd.xlane.f32.xlu1 %v2353_v16 }
 0x392   : > { %6394 = vst [vmem:[#allocation13_spill] sm:$0xff] %v5901_v0  ;;  %v2034_v41 = vpop.xlane.xlu0 %2033  ;;  %v2392_v28 = vsel %vm298_vm0, %v5901_v0, 0.0 }
 0x393   : > { %v5906_v20 = vpop.eup %4842  ;;  %4852 = vpow2.f32 %v2214_v47  ;;  %v2216_v2 = vmul.f32 1.442695, %v2119_v1  ;;  %v2132_v7 = vsub.f32 %v5611_v23, %v2034_v41  ;;  %2393 = vadd.xlane.f32.xlu0 %v2392_v28 }
 0x394   : > { %v2037_v14 = vpop.xlane.xlu1 %2036  ;;  %v2395_v8 = vsel %vm298_vm0, %v5906_v20, 0.0 }
 0x395   : > { %v5911_v57 = vpop.eup %4844  ;;  %4854 = vpow2.f32 %v2216_v2  ;;  %v2242_v38 = vmul.f32 1.442695, %v2132_v7  ;;  %v2133_v3 = vsub.f32 %v5616_v51, %v2037_v14  ;;  %2396 = vadd.xlane.f32.xlu1 %v2395_v8  ;;  %v6396_v2 = vld [vmem:[#allocation21_spill] sm:$0xff] }
 0x396   : > { %v2028_v44 = vpop.xlane.xlu0 %2027  ;;  %v2386_v48 = vsel %vm298_vm0, %v5911_v57, 0.0 }
 0x397   : > { %v5916_v16 = vpop.eup %4846  ;;  %4856 = vpow2.f32 %v2242_v38  ;;  %v2244_v23 = vmul.f32 1.442695, %v2133_v3  ;;  %v2130_v47 = vsub.f32 %v5621_v12, %v2028_v44  ;;  %2387 = vadd.xlane.f32.xlu0 %v2386_v48  ;;  %v6398_v3 = vld [vmem:[#allocation22_spill] sm:$0xff] }
 0x398   : > { %v2031_v1 = vpop.xlane.xlu1 %2030  ;;  %v2389_v41 = vsel %vm298_vm0, %v5916_v16, 0.0 }
 0x399   : > { %v5921_v28 = vpop.eup %4848  ;;  %4858 = vpow2.f32 %v2244_v23  ;;  %v2238_v51 = vmul.f32 1.442695, %v2130_v47  ;;  %v2131_v7 = vsub.f32 %v6396_v2, %v2031_v1  ;;  %2390 = vadd.xlane.f32.xlu1 %v2389_v41  ;;  %v6400_v1 = vld [vmem:[#allocation23_spill] sm:$0xff] }
 0x39a   : > { %6395 = vst [vmem:[#allocation14_spill] sm:$0xff] %v5921_v28  ;;  %v2022_v14 = vpop.xlane.xlu0 %2021  ;;  %v2380_v8 = vsel %vm298_vm0, %v5921_v28, 0.0 }
 0x39b   : > { %v5926_v38 = vpop.eup %4850  ;;  %4860 = vpow2.f32 %v2238_v51  ;;  %v2240_v12 = vmul.f32 1.442695, %v2131_v7  ;;  %v2128_v44 = vsub.f32 %v6398_v3, %v2022_v14  ;;  %2381 = vadd.xlane.f32.xlu0 %v2380_v8  ;;  %v6401_v14 = vld [vmem:[#allocation24_spill] sm:$0xff] }
 0x39c   : > { %6397 = vst [vmem:[#allocation15_spill] sm:$0xff] %v5926_v38  ;;  %v2025_v48 = vpop.xlane.xlu1 %2024  ;;  %v2383_v0 = vsel %vm298_vm0, %v5926_v38, 0.0 }
 0x39d   : > { %v5931_v23 = vpop.eup %4852  ;;  %4862 = vpow2.f32 %v2240_v12  ;;  %v2234_v47 = vmul.f32 1.442695, %v2128_v44  ;;  %v2129_v41 = vsub.f32 %v6400_v1, %v2025_v48  ;;  %2384 = vadd.xlane.f32.xlu1 %v2383_v0  ;;  %v6403_v0 = vld [vmem:[#allocation25_spill] sm:$0xff] }
 0x39e   : > { %6399 = vst [vmem:[#allocation16_spill] sm:$0xff] %v5931_v23  ;;  %v2016_v2 = vpop.xlane.xlu0 %2015  ;;  %v2374_v28 = vsel %vm298_vm0, %v5931_v23, 0.0 }
 0x39f   : > { %v5936_v51 = vpop.eup %4854  ;;  %4864 = vpow2.f32 %v2234_v47  ;;  %v2236_v7 = vmul.f32 1.442695, %v2129_v41  ;;  %v2126_v8 = vsub.f32 %v6401_v14, %v2016_v2  ;;  %2375 = vadd.xlane.f32.xlu0 %v2374_v28 }
 0x3a0   : > { %v2019_v3 = vpop.xlane.xlu1 %2018  ;;  %v2377_v38 = vsel %vm298_vm0, %v5936_v51, 0.0 }
 0x3a1   : > { %v5941_v12 = vpop.eup %4856  ;;  %4866 = vpow2.f32 %v2236_v7  ;;  %v2230_v44 = vmul.f32 1.442695, %v2126_v8  ;;  %v2127_v48 = vsub.f32 %v6403_v0, %v2019_v3  ;;  %2378 = vadd.xlane.f32.xlu1 %v2377_v38 }
 0x3a2   : > { %6402 = vst [vmem:[#allocation17_spill] sm:$0xff] %v5941_v12  ;;  %v2416_v1 = vsel %vm298_vm0, %v5941_v12, 0.0 }
 0x3a3   : > { %v5946_v23 = vpop.eup %4858  ;;  %4868 = vpow2.f32 %v2230_v44  ;;  %v2232_v47 = vmul.f32 1.442695, %v2127_v48  ;;  %2417 = vadd.xlane.f32.xlu0 %v2416_v1 }
 0x3a4   : > { %6404 = vst [vmem:[#allocation18_spill] sm:$0xff] %v5946_v23  ;;  %v2419_v28 = vsel %vm298_vm0, %v5946_v23, 0.0 }
 0x3a5   : > { %v5950_v41 = vpop.eup %4860  ;;  %4870 = vpow2.f32 %v2232_v47  ;;  %2420 = vadd.xlane.f32.xlu1 %v2419_v28 }
 0x3a6   : > { %6405 = vst [vmem:[#allocation19_spill] sm:$0xff] %v5950_v41  ;;  %v2410_v2 = vsel %vm298_vm0, %v5950_v41, 0.0 }
 0x3a7   : > { %v5954_v7 = vpop.eup %4862  ;;  %2411 = vadd.xlane.f32.xlu0 %v2410_v2  ;;  %v6410_v2 = vld [vmem:[#allocation27_spill] sm:$0xff] }
 0x3a8   : > { %6406 = vst [vmem:[#allocation20_spill] sm:$0xff] %v5954_v7  ;;  %v2413_v38 = vsel %vm298_vm0, %v5954_v7, 0.0 }
 0x3a9   : > { %v5958_v14 = vpop.eup %4864  ;;  %2414 = vadd.xlane.f32.xlu1 %v2413_v38 }
 0x3aa   : > { %6407 = vst [vmem:[#allocation21_spill] sm:$0xff] %v5958_v14  ;;  %v2404_v8 = vsel %vm298_vm0, %v5958_v14, 0.0 }
 0x3ab   : > { %v5962_v3 = vpop.eup %4866  ;;  %2405 = vadd.xlane.f32.xlu0 %v2404_v8  ;;  %v2058_v44 = vpop.xlane.xlu0 %2057 }
 0x3ac   : > { %6408 = vst [vmem:[#allocation22_spill] sm:$0xff] %v5962_v3  ;;  %v2140_v0 = vsub.f32 %v5655_v40, %v2058_v44  ;;  %v2407_v48 = vsel %vm298_vm0, %v5962_v3, 0.0  ;;  %v6412_v40 = vld [vmem:[#allocation26_spill] sm:$0xff] }
 0x3ad   : > { %v5967_v1 = vpop.eup %4868  ;;  %v2061_v47 = vpop.xlane.xlu1 %2060  ;;  %2408 = vadd.xlane.f32.xlu1 %v2407_v48 }
 0x3ae   : > { %6409 = vst [vmem:[#allocation23_spill] sm:$0xff] %v5967_v1  ;;  %v2258_v28 = vmul.f32 1.442695, %v2140_v0  ;;  %v2141_v12 = vsub.f32 %v6410_v2, %v2061_v47  ;;  %v2398_v38 = vsel %vm298_vm0, %v5967_v1, 0.0  ;;  %v6413_v1 = vld [vmem:[#allocation28_spill] sm:$0xff] }
 0x3af   : > { %v5972_v14 = vpop.eup %4870  ;;  %2399 = vadd.xlane.f32.xlu0 %v2398_v38  ;;  %v2052_v8 = vpop.xlane.xlu0 %2051 }
 0x3b0   : > { %6411 = vst [vmem:[#allocation24_spill] sm:$0xff] %v5972_v14  ;;  %4872 = vpow2.f32 %v2258_v28  ;;  %v2260_v7 = vmul.f32 1.442695, %v2141_v12  ;;  %v2138_v44 = vsub.f32 %v6412_v40, %v2052_v8  ;;  %v2401_v3 = vsel %vm298_vm0, %v5972_v14, 0.0 }
 0x3b1   : > { %v2055_v41 = vpop.xlane.xlu1 %2054  ;;  %2402 = vadd.xlane.f32.xlu1 %v2401_v3 }
 0x3b2   : > { %4874 = vpow2.f32 %v2260_v7  ;;  %v2254_v0 = vmul.f32 1.442695, %v2138_v44  ;;  %v2139_v48 = vsub.f32 %v5666_v58, %v2055_v41 }
 0x3b3   : > { %v2046_v47 = vpop.xlane.xlu0 %2045 }
 0x3b4   : > { %4876 = vpow2.f32 %v2254_v0  ;;  %v2256_v2 = vmul.f32 1.442695, %v2139_v48  ;;  %v2136_v23 = vsub.f32 %v6413_v1, %v2046_v47 }
 0x3b5   : > { %v2049_v38 = vpop.xlane.xlu1 %2048 }
 0x3b6   : > { %4878 = vpow2.f32 %v2256_v2  ;;  %v2250_v28 = vmul.f32 1.442695, %v2136_v23  ;;  %v2137_v12 = vsub.f32 %v5676_v46, %v2049_v38 }
 0x3b7   : > { %v2040_v8 = vpop.xlane.xlu0 %2039 }
 0x3b8   : > { %4880 = vpow2.f32 %v2250_v28  ;;  %v2252_v40 = vmul.f32 1.442695, %v2137_v12  ;;  %v2134_v14 = vsub.f32 %v5683_v31, %v2040_v8 }
 0x3b9   : > { %v2043_v3 = vpop.xlane.xlu1 %2042 }
 0x3ba   : > { %v5981_v7 = vpop.eup %4872  ;;  %4882 = vpow2.f32 %v2252_v40  ;;  %v2246_v58 = vmul.f32 1.442695, %v2134_v14  ;;  %v2135_v41 = vsub.f32 %v5686_v56, %v2043_v3 }
 0x3bb   : > { %v2082_v44 = vpop.xlane.xlu0 %2081  ;;  %v2440_v1 = vsel %vm298_vm0, %v5981_v7, 0.0 }
 0x3bc   : > { %v5986_v0 = vpop.eup %4874  ;;  %4884 = vpow2.f32 %v2246_v58  ;;  %v2248_v46 = vmul.f32 1.442695, %v2135_v41  ;;  %2441 = vadd.xlane.f32.xlu0 %v2440_v1 }
 0x3bd   : > { %v2085_v23 = vpop.xlane.xlu1 %2084  ;;  %v2443_v31 = vsel %vm298_vm0, %v5986_v0, 0.0 }
 0x3be   : > { %v5990_v48 = vpop.eup %4876  ;;  %4886 = vpow2.f32 %v2248_v46  ;;  %2444 = vadd.xlane.f32.xlu1 %v2443_v31  ;;  %v2148_v46 = vsub.f32 %v5689_v24, %v2082_v44 }
 0x3bf   : > { %v2076_v14 = vpop.xlane.xlu0 %2075  ;;  %v2434_v56 = vsel %vm298_vm0, %v5990_v48, 0.0 }
 0x3c0   : > { %v5994_v47 = vpop.eup %4878  ;;  %v2146_v2 = vsub.f32 %v5703_v18, %v2076_v14  ;;  %2435 = vadd.xlane.f32.xlu0 %v2434_v56 }
 0x3c1   : > { %v2079_v38 = vpop.xlane.xlu1 %2078  ;;  %v2437_v28 = vsel %vm298_vm0, %v5994_v47, 0.0 }
 0x3c2   : > { %v5999_v12 = vpop.eup %4880  ;;  %v2270_v8 = vmul.f32 1.442695, %v2146_v2  ;;  %v2147_v40 = vsub.f32 %v5706_v21, %v2079_v38  ;;  %2438 = vadd.xlane.f32.xlu1 %v2437_v28 }
 0x3c3   : > { %v2070_v3 = vpop.xlane.xlu0 %2069  ;;  %v2428_v58 = vsel %vm298_vm0, %v5999_v12, 0.0 }
 0x3c4   : > { %v6004_v41 = vpop.eup %4882  ;;  %4888 = vpow2.f32 %v2270_v8  ;;  %v2272_v1 = vmul.f32 1.442695, %v2147_v40  ;;  %v2144_v18 = vsub.f32 %v5709_v27, %v2070_v3  ;;  %2429 = vadd.xlane.f32.xlu0 %v2428_v58  ;;  %v2149_v27 = vsub.f32 %v5696_v22, %v2085_v23 }
 0x3c5   : > { %v2073_v31 = vpop.xlane.xlu1 %2072  ;;  %v2431_v14 = vsel %vm298_vm0, %v6004_v41, 0.0  ;;  %v2274_v40 = vmul.f32 1.442695, %v2148_v46 }
 0x3c6   : > { %v6010_v56 = vpop.eup %4884  ;;  %4890 = vpow2.f32 %v2272_v1  ;;  %v2266_v21 = vmul.f32 1.442695, %v2144_v18  ;;  %v2145_v2 = vsub.f32 %v5716_v43, %v2073_v31  ;;  %2432 = vadd.xlane.f32.xlu1 %v2431_v14  ;;  %v2276_v18 = vmul.f32 1.442695, %v2149_v27 }
 0x3c7   : > { %v2064_v38 = vpop.xlane.xlu0 %2063  ;;  %v2422_v28 = vsel %vm298_vm0, %v6010_v56, 0.0 }
 0x3c8   : > { %v6015_v8 = vpop.eup %4886  ;;  %4892 = vpow2.f32 %v2266_v21  ;;  %v2268_v24 = vmul.f32 1.442695, %v2145_v2  ;;  %v2142_v44 = vsub.f32 %v5724_v50, %v2064_v38  ;;  %2423 = vadd.xlane.f32.xlu0 %v2422_v28 }
 0x3c9   : > { %v2067_v3 = vpop.xlane.xlu1 %2066  ;;  %v2425_v58 = vsel %vm298_vm0, %v6015_v8, 0.0 }
 0x3ca   : > { %4894 = vpow2.f32 %v2268_v24  ;;  %v2262_v43 = vmul.f32 1.442695, %v2142_v44  ;;  %v2143_v1 = vsub.f32 %v5728_v37, %v2067_v3  ;;  %2426 = vadd.xlane.f32.xlu1 %v2425_v58 }
 0x3cc   : > { %4896 = vpow2.f32 %v2262_v43  ;;  %v2264_v31 = vmul.f32 1.442695, %v2143_v1 }
 0x3cd   : > { %4898 = vpow2.f32 %v2274_v40 }
 0x3ce   : > { %v6022_v22 = vpop.eup %4888  ;;  %4900 = vpow2.f32 %v2264_v31 }
 0x3cf   : > { %v2458_v50 = vsel %vm298_vm0, %v6022_v22, 0.0  ;;  %4902 = vpow2.f32 %v2276_v18 }
 0x3d0   : > { %v6026_v23 = vpop.eup %4890  ;;  %2459 = vadd.xlane.f32.xlu0 %v2458_v50  ;;  %v2286_v46 = vpop.xlane.xlu0 %2285 }
 0x3d1   : > { %v2461_v14 = vsel %vm298_vm0, %v6026_v23, 0.0 }
 0x3d2   : > { %v6030_v37 = vpop.eup %4892  ;;  %2462 = vadd.xlane.f32.xlu1 %v2461_v14  ;;  %v2289_v21 = vpop.xlane.xlu1 %2288 }
 0x3d3   : > { %6414 = vst [vmem:[#allocation25_spill] sm:$0xff] %v6030_v37  ;;  %v2452_v2 = vsel %vm298_vm0, %v6030_v37, 0.0  ;;  %4904 = vrcp.f32 %v2289_v21 }
 0x3d4   : > { %v6034_v38 = vpop.eup %4894  ;;  %2453 = vadd.xlane.f32.xlu0 %v2452_v2  ;;  %v2280_v28 = vpop.xlane.xlu0 %2279 }
 0x3d5   : > { %4906 = vrcp.f32 %v2280_v28  ;;  %v2455_v27 = vsel %vm298_vm0, %v6034_v38, 0.0 }
 0x3d6   : > { %v6038_v24 = vpop.eup %4896  ;;  %4908 = vrcp.f32 %v2286_v46  ;;  %2456 = vadd.xlane.f32.xlu1 %v2455_v27  ;;  %v2283_v44 = vpop.xlane.xlu1 %2282 }
 0x3d7   : > { %6415 = vst [vmem:[#allocation27_spill] sm:$0xff] %v6038_v24  ;;  %v6040_v40 = vpop.eup %4898  ;;  %4910 = vrcp.f32 %v2283_v44  ;;  %v2446_v3 = vsel %vm298_vm0, %v6038_v24, 0.0  ;;  %v6419_v24 = vld [vmem:[#allocation5_spill] sm:$0xff] }
 0x3d8   : > { %6416 = vst [vmem:[#allocation26_spill] sm:$0xff] %v6040_v40  ;;  %v6044_v58 = vpop.eup %4900  ;;  %2447 = vadd.xlane.f32.xlu0 %v2446_v3  ;;  %v2310_v43 = vpop.xlane.xlu0 %2309  ;;  %v2464_v50 = vsel %vm298_vm0, %v6040_v40, 0.0 }
 0x3d9   : > { %6417 = vst [vmem:[#allocation28_spill] sm:$0xff] %v6044_v58  ;;  %v2449_v1 = vsel %vm298_vm0, %v6044_v58, 0.0  ;;  %v6048_v18 = vpop.eup %4902 }
 0x3da   : > { %6418 = vst [vmem:[#allocation29_spill] sm:$0xff] %v6048_v18  ;;  %2450 = vadd.xlane.f32.xlu1 %v2449_v1  ;;  %v2313_v31 = vpop.xlane.xlu1 %2312  ;;  %v2467_v14 = vsel %vm298_vm0, %v6048_v18, 0.0 }
 0x3db   : > { %4912 = vrcp.f32 %v2313_v31 }
 0x3dc   : > { %2465 = vadd.xlane.f32.xlu0 %v2464_v50  ;;  %v2304_v46 = vpop.xlane.xlu0 %2303 }
 0x3dd   : > { %4914 = vrcp.f32 %v2304_v46  ;;  %v4905_v21 = vpop.eup %4904 }
 0x3de   : > { %4916 = vrcp.f32 %v2310_v43  ;;  %2468 = vadd.xlane.f32.xlu1 %v2467_v14  ;;  %v2307_v2 = vpop.xlane.xlu1 %2306  ;;  %v2537_v1 = vmul.f32 %v4905_v21, %v5746_v60  ;;  %v4248_v60 = vcombine.low %v6419_v24, %v6419_v24 }
 0x3df   : > { %v4907_v28 = vpop.eup %4906  ;;  %4918 = vrcp.f32 %v2307_v2 }
 0x3e0   : > { %v4909_v27 = vpop.eup %4908  ;;  %v2298_v44 = vpop.xlane.xlu0 %2297  ;;  %v2534_v31 = vmul.f32 %v4907_v28, %v5751_v35  ;;  %v6420_v35 = vld [vmem:[#allocation11_spill] sm:$0xff] }
 0x3e1   : > { %v4911_v3 = vpop.eup %4910  ;;  %v2536_v46 = vmul.f32 %v4909_v27, %v5741_v34  ;;  %v2753_v34 = vsel %vm298_vm0, %v6420_v35, 0  ;;  %v6422_v35 = vld [vmem:[#allocation12_spill] sm:$0xff] }
 0x3e2   : > { %v2301_v37 = vpop.xlane.xlu1 %2300  ;;  %v2535_v50 = vmul.f32 %v4911_v3, %v5756_v32 }
 0x3e3   : > { %4920 = vrcp.f32 %v2301_v37  ;;  %v2599_v43 = vpack.c.bf16 %v2537_v1, %v2536_v46 }
 0x3e4   : > { %v2292_v18 = vpop.xlane.xlu0 %2291  ;;  %v2598_v40 = vpack.c.bf16 %v2535_v50, %v2534_v31  ;;  %v6421_v31 = vld [vmem:[#allocation7_spill] sm:$0xff] }
 0x3e5   : > { %4922 = vrcp.f32 %v2292_v18  ;;  %v4913_v14 = vpop.eup %4912  ;;  %v6072_v50 = vcombine.low %v6421_v31, %v6421_v31 }
 0x3e6   : > { %4924 = vrcp.f32 %v2298_v44  ;;  %v2295_v2 = vpop.xlane.xlu1 %2294  ;;  %4584 = vmatprep.mubr.msk.bf16.mxu1 %vm298_vm0, %v2598_v40  ;;  %v2545_v18 = vmul.f32 %v4913_v14, %v5766_v36  ;;  %v2869_v36 = vsel %vm298_vm0, %v4248_v60, 0 }
 0x3e7   : > { %v4915_v58 = vpop.eup %4914  ;;  %4926 = vrcp.f32 %v2295_v2  ;;  %4585 = vmatmul.mubr.msk.bf16.vlgmr.msra.gmra.mrb[32].mxu1 %vm298_vm0, %v2599_v43 }
 0x3e8   : > { %v4917_v32 = vpop.eup %4916  ;;  %4595 = vmatpush3.bf16.xpose.msra.mxu1 %v2753_v34  ;;  %v2542_v21 = vmul.f32 %v4915_v58, %v5770_v5 }
 0x3e9   : > { %v4919_v37 = vpop.eup %4918  ;;  %4718 = vmatprep.subr.msk.bf16.mxu1 %vm298_vm0, %v4248_v60  ;;  %v2544_v28 = vmul.f32 %v4917_v32, %v5761_v59  ;;  %v4249_v60 = vcombine.high %v6419_v24, %v6419_v24 }
 0x3ea   : > { %v2543_v40 = vmul.f32 %v4919_v37, %v5774_v42 }
 0x3eb   : > { %v2603_v44 = vpack.c.bf16 %v2545_v18, %v2544_v28 }
 0x3ec   : > { %v2602_v27 = vpack.c.bf16 %v2543_v40, %v2542_v21 }
 0x3ed   : > { %v4921_v3 = vpop.eup %4920 }
 0x3ee   : > { %4596 = vmatprep.mubr.msk.bf16.mxu1 %vm298_vm0, %v2602_v27  ;;  %v2541_v42 = vmul.f32 %v4921_v3, %v5782_v53  ;;  %v2811_v53 = vsel %vm298_vm0, %v6422_v35, 0 }
 0x3ef   : > { %v4923_v1 = vpop.eup %4922  ;;  %4597 = vmatmul.mubr.msk.bf16.vlgmr.msra.gmra.mrb[36].mxu1 %vm298_vm0, %v2603_v44 }
 0x3f0   : > { %v4925_v46 = vpop.eup %4924  ;;  %4607 = vmatpush3.bf16.xpose.msra.mxu1 %v2869_v36  ;;  %v2538_v59 = vmul.f32 %v4923_v1, %v5786_v19 }
 0x3f1   : > { %v4927_v5 = vpop.eup %4926  ;;  %4720 = vmatprep.subr.msk.bf16.mxu1 %vm298_vm0, %v6072_v50  ;;  %v2540_v43 = vmul.f32 %v4925_v46, %v5778_v9 }
 0x3f2   : > { %v2539_v58 = vmul.f32 %v4927_v5, %v5790_v26 }
 0x3f3   : > { %v2601_v2 = vpack.c.bf16 %v2541_v42, %v2540_v43 }
 0x3f4   : > { %v2600_v14 = vpack.c.bf16 %v2539_v58, %v2538_v59 }
 0x3f6   : > { %4590 = vmatprep.mubr.msk.bf16.mxu0 %vm298_vm0, %v2600_v14 }
 0x3f7   : > { %4591 = vmatmul.mubr.msk.bf16.vlgmr.msra.gmra.mrb[48].mxu0 %vm298_vm0, %v2601_v2 }
 0x3f8   : > { %4601 = vmatpush3.bf16.xpose.msra.mxu0 %v2811_v53  ;;  %v2322_v34 = vpop.xlane.xlu0 %2321 }
 0x3f9   : > { %4719 = vmatprep.subr.msk.bf16.mxu0 %vm298_vm0, %v4249_v60 }
 0x3fa   : > { %v2325_v19 = vpop.xlane.xlu1 %2324 }
 0x3fb   : > { %4928 = vrcp.f32 %v2325_v19 }
 0x3fc   : > { %v2316_v26 = vpop.xlane.xlu0 %2315 }
 0x3fd   : > { %4930 = vrcp.f32 %v2316_v26 }
 0x3fe   : > { %4932 = vrcp.f32 %v2322_v34  ;;  %v2319_v9 = vpop.xlane.xlu1 %2318 }
 0x3ff   : > { %4934 = vrcp.f32 %v2319_v9 }
 0x400   : > { %v2346_v32 = vpop.xlane.xlu0 %2345 }
 0x402   : > { %v2349_v37 = vpop.xlane.xlu1 %2348 }
 0x403   : > { %4936 = vrcp.f32 %v2349_v37 }
 0x404   : > { %v2340_v24 = vpop.xlane.xlu0 %2339 }
 0x405   : > { %4938 = vrcp.f32 %v2340_v24  ;;  %v4929_v18 = vpop.eup %4928 }
 0x406   : > { %4940 = vrcp.f32 %v2346_v32  ;;  %v2343_v21 = vpop.xlane.xlu1 %2342  ;;  %v2549_v3 = vmul.f32 %v4929_v18, %v5806_v33  ;;  %v4251_v33 = vcombine.high %v6421_v31, %v6421_v31  ;;  %v6423_v18 = vld [vmem:[#allocation6_spill] sm:$0xff] }
 0x407   : > { %v4931_v40 = vpop.eup %4930  ;;  %4942 = vrcp.f32 %v2343_v21  ;;  %v4253_v21 = vcombine.high %v6423_v18, %v6423_v18 }
 0x408   : > { %v4933_v28 = vpop.eup %4932  ;;  %v2334_v27 = vpop.xlane.xlu0 %2333  ;;  %v2546_v36 = vmul.f32 %v4931_v40, %v5811_v29  ;;  %v2927_v29 = vsel %vm298_vm0, %v4249_v60, 0 }
 0x409   : > { %v4935_v44 = vpop.eup %4934  ;;  %v2548_v5 = vmul.f32 %v4933_v28, %v5801_v62 }
 0x40a   : > { %v2337_v1 = vpop.xlane.xlu1 %2336  ;;  %v2547_v46 = vmul.f32 %v4935_v44, %v5816_v10 }
 0x40b   : > { %4944 = vrcp.f32 %v2337_v1  ;;  %v2605_v58 = vpack.c.bf16 %v2549_v3, %v2548_v5 }
 0x40c   : > { %v2328_v42 = vpop.xlane.xlu0 %2327  ;;  %v2604_v59 = vpack.c.bf16 %v2547_v46, %v2546_v36 }
 0x40d   : > { %4946 = vrcp.f32 %v2328_v42  ;;  %v4937_v43 = vpop.eup %4936 }
 0x40e   : > { %4948 = vrcp.f32 %v2334_v27  ;;  %v2331_v14 = vpop.xlane.xlu1 %2330  ;;  %4602 = vmatprep.mubr.msk.bf16.mxu0 %vm298_vm0, %v2604_v59  ;;  %v2557_v53 = vmul.f32 %v4937_v43, %v5826_v15 }
 0x40f   : > { %v4939_v2 = vpop.eup %4938  ;;  %4950 = vrcp.f32 %v2331_v14  ;;  %4603 = vmatmul.mubr.msk.bf16.vlgmr.msra.gmra.mrb[52].mxu0 %vm298_vm0, %v2605_v58  ;;  %v4252_v58 = vcombine.low %v6423_v18, %v6423_v18 }
 0x410   : > { %v4941_v62 = vpop.eup %4940  ;;  %4613 = vmatpush3.bf16.xpose.msra.mxu0 %v2927_v29  ;;  %v2370_v10 = vpop.xlane.xlu0 %2369  ;;  %v2554_v19 = vmul.f32 %v4939_v2, %v5831_v45  ;;  %v3043_v45 = vsel %vm298_vm0, %v4251_v33, 0 }
 0x411   : > { %v4943_v35 = vpop.eup %4942  ;;  %4721 = vmatprep.subr.msk.bf16.mxu0 %vm298_vm0, %v4251_v33  ;;  %v2556_v31 = vmul.f32 %v4941_v62, %v5821_v17 }
 0x412   : > { %v2373_v34 = vpop.xlane.xlu1 %2372  ;;  %v2555_v26 = vmul.f32 %v4943_v35, %v5836_v63 }
 0x413   : > { %4952 = vrcp.f32 %v2373_v34  ;;  %v2609_v60 = vpack.c.bf16 %v2557_v53, %v2556_v31 }
 0x414   : > { %v2364_v9 = vpop.xlane.xlu0 %2363  ;;  %v2608_v32 = vpack.c.bf16 %v2555_v26, %v2554_v19  ;;  %v6424_v19 = vld [vmem:[#allocation8_spill] sm:$0xff] }
 0x415   : > { %4954 = vrcp.f32 %v2364_v9  ;;  %v4945_v37 = vpop.eup %4944  ;;  %v4255_v26 = vcombine.high %v6424_v19, %v6424_v19 }
 0x416   : > { %4956 = vrcp.f32 %v2370_v10  ;;  %v2367_v24 = vpop.xlane.xlu1 %2366  ;;  %4614 = vmatprep.mubr.msk.bf16.mxu0 %vm298_vm0, %v2608_v32  ;;  %v2553_v28 = vmul.f32 %v4945_v37, %v5846_v39 }
 0x417   : > { %v4947_v15 = vpop.eup %4946  ;;  %4958 = vrcp.f32 %v2367_v24  ;;  %4615 = vmatmul.mubr.msk.bf16.vlgmr.msra.gmra.mrb[56].mxu0 %vm298_vm0, %v2609_v60 }
 0x418   : > { %v4949_v17 = vpop.eup %4948  ;;  %4625 = vmatpush3.bf16.xpose.msra.mxu0 %v3043_v45  ;;  %v2358_v63 = vpop.xlane.xlu0 %2357  ;;  %v2550_v44 = vmul.f32 %v4947_v15, %v5851_v55 }
 0x419   : > { %v4951_v40 = vpop.eup %4950  ;;  %4723 = vmatprep.subr.msk.bf16.mxu0 %vm298_vm0, %v4253_v21  ;;  %v2552_v1 = vmul.f32 %v4949_v17, %v5841_v54  ;;  %v2985_v54 = vsel %vm298_vm0, %v6072_v50, 0 }
 0x41a   : > { %v2361_v27 = vpop.xlane.xlu1 %2360  ;;  %v2551_v3 = vmul.f32 %v4951_v40, %v5856_v49 }
 0x41b   : > { %4960 = vrcp.f32 %v2361_v27  ;;  %v2607_v5 = vpack.c.bf16 %v2553_v28, %v2552_v1  ;;  %v6425_v1 = vld [vmem:[#allocation13_spill] sm:$0xff] }
 0x41c   : > { %v2352_v36 = vpop.xlane.xlu0 %2351  ;;  %v2606_v46 = vpack.c.bf16 %v2551_v3, %v2550_v44 }
 0x41d   : > { %4962 = vrcp.f32 %v2352_v36  ;;  %v4953_v42 = vpop.eup %4952 }
 0x41e   : > { %4964 = vrcp.f32 %v2358_v63  ;;  %v2355_v59 = vpop.xlane.xlu1 %2354  ;;  %4608 = vmatprep.mubr.msk.bf16.mxu1 %vm298_vm0, %v2606_v46  ;;  %v2565_v14 = vmul.f32 %v4953_v42, %v5866_v4  ;;  %v4254_v63 = vcombine.low %v6424_v19, %v6424_v19 }
 0x41f   : > { %v4955_v39 = vpop.eup %4954  ;;  %4966 = vrcp.f32 %v2355_v59  ;;  %4609 = vmatmul.mubr.msk.bf16.vlgmr.msra.gmra.mrb[40].mxu1 %vm298_vm0, %v2607_v5 }
 0x420   : > { %v4957_v55 = vpop.eup %4956  ;;  %4619 = vmatpush3.bf16.xpose.msra.mxu1 %v2985_v54  ;;  %v2394_v49 = vpop.xlane.xlu0 %2393  ;;  %v2562_v33 = vmul.f32 %v4955_v39, %v5871_v11  ;;  %v3159_v11 = vsel %vm298_vm0, %v4253_v21, 0 }
 0x421   : > { %v4959_v43 = vpop.eup %4958  ;;  %4722 = vmatprep.subr.msk.bf16.mxu1 %vm298_vm0, %v4252_v58  ;;  %v2564_v62 = vmul.f32 %v4957_v55, %v5861_v25 }
 0x422   : > { %v2397_v2 = vpop.xlane.xlu1 %2396  ;;  %v2563_v29 = vmul.f32 %v4959_v43, %v5876_v6  ;;  %v6427_v43 = vld [vmem:[#allocation15_spill] sm:$0xff] }
 0x423   : > { %4968 = vrcp.f32 %v2397_v2  ;;  %v2613_v50 = vpack.c.bf16 %v2565_v14, %v2564_v62 }
 0x424   : > { %v2388_v10 = vpop.xlane.xlu0 %2387  ;;  %v2612_v35 = vpack.c.bf16 %v2563_v29, %v2562_v33  ;;  %v6428_v33 = vld [vmem:[#allocation16_spill] sm:$0xff] }
 0x425   : > { %4970 = vrcp.f32 %v2388_v10  ;;  %v4961_v53 = vpop.eup %4960  ;;  %v6429_v10 = vld [vmem:[#allocation14_spill] sm:$0xff] }
 0x426   : > { %4972 = vrcp.f32 %v2394_v49  ;;  %v2391_v34 = vpop.xlane.xlu1 %2390  ;;  %4626 = vmatprep.mubr.msk.bf16.mxu0 %vm298_vm0, %v2612_v35  ;;  %v2561_v9 = vmul.f32 %v4961_v53, %v5886_v30 }
 0x427   : > { %v4963_v4 = vpop.eup %4962  ;;  %4974 = vrcp.f32 %v2391_v34  ;;  %4627 = vmatmul.mubr.msk.bf16.vlgmr.msra.gmra.mrb[60].mxu0 %vm298_vm0, %v2613_v50 }
 0x428   : > { %v4965_v25 = vpop.eup %4964  ;;  %4637 = vmatpush3.bf16.xpose.msra.mxu0 %v3159_v11  ;;  %v2382_v6 = vpop.xlane.xlu0 %2381  ;;  %v2558_v60 = vmul.f32 %v4963_v4, %v5891_v61  ;;  %v3101_v61 = vsel %vm298_vm0, %v4252_v58, 0  ;;  %v6426_v58 = vld [vmem:[#allocation9_spill] sm:$0xff] }
 0x429   : > { %v4967_v31 = vpop.eup %4966  ;;  %4725 = vmatprep.subr.msk.bf16.mxu0 %vm298_vm0, %v4255_v26  ;;  %v2560_v24 = vmul.f32 %v4965_v25, %v5881_v52  ;;  %v4257_v54 = vcombine.high %v6426_v58, %v6426_v58  ;;  %v4256_v11 = vcombine.low %v6426_v58, %v6426_v58 }
 0x42a   : > { %v2385_v32 = vpop.xlane.xlu1 %2384  ;;  %v2559_v37 = vmul.f32 %v4967_v31, %v5896_v13  ;;  %v6430_v31 = vld [vmem:[#allocation18_spill] sm:$0xff] }
 0x42b   : > { %4976 = vrcp.f32 %v2385_v32  ;;  %v2611_v21 = vpack.c.bf16 %v2561_v9, %v2560_v24  ;;  %v6431_v32 = vld [vmem:[#allocation19_spill] sm:$0xff] }
 0x42c   : > { %v2376_v15 = vpop.xlane.xlu0 %2375  ;;  %v2610_v18 = vpack.c.bf16 %v2559_v37, %v2558_v60  ;;  %v6432_v37 = vld [vmem:[#allocation20_spill] sm:$0xff] }
 0x42d   : > { %4978 = vrcp.f32 %v2376_v15  ;;  %v4969_v45 = vpop.eup %4968  ;;  %v6433_v15 = vld [vmem:[#allocation17_spill] sm:$0xff] }
 0x42e   : > { %4980 = vrcp.f32 %v2382_v6  ;;  %v2379_v17 = vpop.xlane.xlu1 %2378  ;;  %4620 = vmatprep.mubr.msk.bf16.mxu1 %vm298_vm0, %v2610_v18  ;;  %v2573_v28 = vmul.f32 %v4969_v45, %v5906_v20 }
 0x42f   : > { %v4971_v30 = vpop.eup %4970  ;;  %4982 = vrcp.f32 %v2379_v17  ;;  %4621 = vmatmul.mubr.msk.bf16.vlgmr.msra.gmra.mrb[44].mxu1 %vm298_vm0, %v2611_v21 }
 0x430   : > { %v4973_v52 = vpop.eup %4972  ;;  %4631 = vmatpush3.bf16.xpose.msra.mxu1 %v3101_v61  ;;  %v2418_v13 = vpop.xlane.xlu0 %2417  ;;  %v2570_v44 = vmul.f32 %v4971_v30, %v5911_v57  ;;  %v3275_v57 = vsel %vm298_vm0, %v4255_v26, 0 }
 0x431   : > { %v4975_v40 = vpop.eup %4974  ;;  %4724 = vmatprep.subr.msk.bf16.mxu1 %vm298_vm0, %v4254_v63  ;;  %v2572_v36 = vmul.f32 %v4973_v52, %v6425_v1  ;;  %v3391_v52 = vsel %vm298_vm0, %v4257_v54, 0 }
 0x432   : > { %v2421_v27 = vpop.xlane.xlu1 %2420  ;;  %v2571_v3 = vmul.f32 %v4975_v40, %v5916_v16 }
 0x433   : > { %4984 = vrcp.f32 %v2421_v27  ;;  %v2617_v42 = vpack.c.bf16 %v2573_v28, %v2572_v36  ;;  %v6435_v28 = vld [vmem:[#allocation22_spill] sm:$0xff]  ;;  %v6437_v36 = vld [vmem:[#allocation24_spill] sm:$0xff] }
 0x434   : > { %v2412_v46 = vpop.xlane.xlu0 %2411  ;;  %v2616_v5 = vpack.c.bf16 %v2571_v3, %v2570_v44  ;;  %v6436_v3 = vld [vmem:[#allocation23_spill] sm:$0xff] }
 0x435   : > { %4986 = vrcp.f32 %v2412_v46  ;;  %v4977_v59 = vpop.eup %4976 }
 0x436   : > { %4988 = vrcp.f32 %v2418_v13  ;;  %v2415_v39 = vpop.xlane.xlu1 %2414  ;;  %4638 = vmatprep.mubr.msk.bf16.mxu0 %vm298_vm0, %v2616_v5  ;;  %v2569_v14 = vmul.f32 %v4977_v59, %v6427_v43  ;;  %v6438_v5 = vld [vmem:[#allocation21_spill] sm:$0xff] }
 0x437   : > { %v4979_v20 = vpop.eup %4978  ;;  %4990 = vrcp.f32 %v2415_v39  ;;  %4639 = vmatmul.mubr.msk.bf16.vlgmr.msra.gmra.mrb[64].mxu0 %vm298_vm0, %v2617_v42 }
 0x438   : > { %v4981_v16 = vpop.eup %4980  ;;  %4649 = vmatpush3.bf16.xpose.msra.mxu0 %v3275_v57  ;;  %v2406_v55 = vpop.xlane.xlu0 %2405  ;;  %v2566_v29 = vmul.f32 %v4979_v20, %v6428_v33 }
 0x439   : > { %v4983_v49 = vpop.eup %4982  ;;  %4727 = vmatprep.subr.msk.bf16.mxu0 %vm298_vm0, %v4257_v54  ;;  %v2568_v35 = vmul.f32 %v4981_v16, %v6429_v10  ;;  %v3333_v16 = vsel %vm298_vm0, %v4256_v11, 0 }
 0x43a   : > { %v2409_v2 = vpop.xlane.xlu1 %2408  ;;  %v2567_v62 = vmul.f32 %v4983_v49, %v5936_v51  ;;  %v3217_v51 = vsel %vm298_vm0, %v4254_v63, 0  ;;  %v6434_v63 = vld [vmem:[#allocation10_spill] sm:$0xff] }
 0x43b   : > { %4992 = vrcp.f32 %v2409_v2  ;;  %v2615_v34 = vpack.c.bf16 %v2569_v14, %v2568_v35  ;;  %v4259_v61 = vcombine.high %v6434_v63, %v6434_v63  ;;  %v4258_v54 = vcombine.low %v6434_v63, %v6434_v63 }
 0x43c   : > { %v2400_v50 = vpop.xlane.xlu0 %2399  ;;  %v2614_v53 = vpack.c.bf16 %v2567_v62, %v2566_v29 }
 0x43d   : > { %4994 = vrcp.f32 %v2400_v50  ;;  %v4985_v4 = vpop.eup %4984 }
 0x43e   : > { %4996 = vrcp.f32 %v2406_v55  ;;  %v2403_v19 = vpop.xlane.xlu1 %2402  ;;  %4632 = vmatprep.mubr.msk.bf16.mxu1 %vm298_vm0, %v2614_v53  ;;  %v2581_v9 = vmul.f32 %v4985_v4, %v6430_v31 }
 0x43f   : > { %v4987_v26 = vpop.eup %4986  ;;  %4998 = vrcp.f32 %v2403_v19  ;;  %4633 = vmatmul.mubr.msk.bf16.vlgmr.msra.gmra.mrb[48].mxu1 %vm298_vm0, %v2615_v34 }
 0x440   : > { %v4989_v25 = vpop.eup %4988  ;;  %4643 = vmatpush3.bf16.xpose.msra.mxu1 %v3217_v51  ;;  %v2578_v60 = vmul.f32 %v4987_v26, %v6431_v32 }
 0x441   : > { %v4991_v6 = vpop.eup %4990  ;;  %4726 = vmatprep.subr.msk.bf16.mxu1 %vm298_vm0, %v4256_v11  ;;  %v2580_v18 = vmul.f32 %v4989_v25, %v6433_v15 }
 0x442   : > { %v2579_v24 = vmul.f32 %v4991_v6, %v6432_v37 }
 0x443   : > { %v2621_v45 = vpack.c.bf16 %v2581_v9, %v2580_v18 }
 0x444   : > { %v2620_v21 = vpack.c.bf16 %v2579_v24, %v2578_v60 }
 0x445   : > { %v4993_v17 = vpop.eup %4992 }
 0x446   : > { %4650 = vmatprep.mubr.msk.bf16.mxu0 %vm298_vm0, %v2620_v21  ;;  %v2577_v27 = vmul.f32 %v4993_v17, %v6435_v28 }
 0x447   : > { %v4995_v30 = vpop.eup %4994  ;;  %4651 = vmatmul.mubr.msk.bf16.vlgmr.msra.gmra.mrb[68].mxu0 %vm298_vm0, %v2621_v45 }
 0x448   : > { %v4997_v13 = vpop.eup %4996  ;;  %4661 = vmatpush3.bf16.xpose.msra.mxu0 %v3391_v52  ;;  %v2574_v1 = vmul.f32 %v4995_v30, %v6436_v3 }
 0x449   : > { %v4999_v40 = vpop.eup %4998  ;;  %4729 = vmatprep.subr.msk.bf16.mxu0 %vm298_vm0, %v4259_v61  ;;  %v2442_v44 = vpop.xlane.xlu0 %2441  ;;  %v2576_v42 = vmul.f32 %v4997_v13, %v6438_v5  ;;  %v6442_v5 = vld [vmem:[#allocation26_spill] sm:$0xff] }
 0x44a   : > { %v2575_v46 = vmul.f32 %v4999_v40, %v6437_v36  ;;  %v6439_v40 = vld [vmem:[#allocation27_spill] sm:$0xff] }
 0x44b   : > { %v2445_v59 = vpop.xlane.xlu1 %2444  ;;  %v2619_v58 = vpack.c.bf16 %v2577_v27, %v2576_v42  ;;  %v6440_v27 = vld [vmem:[#allocation28_spill] sm:$0xff] }
 0x44c   : > { %v2618_v39 = vpack.c.bf16 %v2575_v46, %v2574_v1  ;;  %5000 = vrcp.f32 %v2445_v59  ;;  %v6441_v1 = vld [vmem:[#allocation25_spill] sm:$0xff] }
 0x44d   : > { %v2436_v20 = vpop.xlane.xlu0 %2435  ;;  %v6443_v59 = vld [vmem:[#allocation29_spill] sm:$0xff] }
 0x44e   : > { %5002 = vrcp.f32 %v2436_v20  ;;  %4644 = vmatprep.mubr.msk.bf16.mxu1 %vm298_vm0, %v2618_v39 }
 0x44f   : > { %5004 = vrcp.f32 %v2442_v44  ;;  %v2439_v57 = vpop.xlane.xlu1 %2438  ;;  %4645 = vmatmul.mubr.msk.bf16.vlgmr.msra.gmra.mrb[52].mxu1 %vm298_vm0, %v2619_v58 }
 0x450   : > { %5006 = vrcp.f32 %v2439_v57  ;;  %4655 = vmatpush3.bf16.xpose.msra.mxu1 %v3333_v16 }
 0x451   : > { %4728 = vmatprep.subr.msk.bf16.mxu1 %vm298_vm0, %v4258_v54  ;;  %v2430_v55 = vpop.xlane.xlu0 %2429 }
 0x453   : > { %v2433_v49 = vpop.xlane.xlu1 %2432 }
 0x454   : > { %5008 = vrcp.f32 %v2433_v49 }
 0x455   : > { %v2424_v43 = vpop.xlane.xlu0 %2423 }
 0x456   : > { %5010 = vrcp.f32 %v2424_v43  ;;  %v5001_v14 = vpop.eup %5000 }
 0x457   : > { %5012 = vrcp.f32 %v2430_v55  ;;  %v2427_v2 = vpop.xlane.xlu1 %2426  ;;  %v2589_v10 = vmul.f32 %v5001_v14, %v5986_v0  ;;  %v3507_v0 = vsel %vm298_vm0, %v4259_v61, 0 }
 0x458   : > { %v5003_v33 = vpop.eup %5002  ;;  %5014 = vrcp.f32 %v2427_v2 }
 0x459   : > { %v5005_v29 = vpop.eup %5004  ;;  %v2586_v35 = vmul.f32 %v5003_v33, %v5990_v48 }
 0x45a   : > { %v5007_v62 = vpop.eup %5006  ;;  %v2588_v53 = vmul.f32 %v5005_v29, %v5981_v7 }
 0x45b   : > { %v2587_v50 = vmul.f32 %v5007_v62, %v5994_v47 }
 0x45c   : > { %v2625_v19 = vpack.c.bf16 %v2589_v10, %v2588_v53 }
 0x45d   : > { %v2460_v34 = vpop.xlane.xlu0 %2459  ;;  %v2624_v4 = vpack.c.bf16 %v2587_v50, %v2586_v35 }
 0x45e   : > { %5016 = vrcp.f32 %v2460_v34  ;;  %v5009_v26 = vpop.eup %5008 }
 0x45f   : > { %v2463_v11 = vpop.xlane.xlu1 %2462  ;;  %4662 = vmatprep.mubr.msk.bf16.mxu0 %vm298_vm0, %v2624_v4  ;;  %v2585_v7 = vmul.f32 %v5009_v26, %v6004_v41  ;;  %v3449_v41 = vsel %vm298_vm0, %v4258_v54, 0 }
 0x460   : > { %v5011_v51 = vpop.eup %5010  ;;  %5018 = vrcp.f32 %v2463_v11  ;;  %4663 = vmatmul.mubr.msk.bf16.vlgmr.msra.gmra.mrb[72].mxu0 %vm298_vm0, %v2625_v19 }
 0x461   : > { %v5013_v25 = vpop.eup %5012  ;;  %4673 = vmatpush3.bf16.xpose.msra.mxu0 %v3507_v0  ;;  %v2454_v48 = vpop.xlane.xlu0 %2453  ;;  %v2582_v31 = vmul.f32 %v5011_v51, %v6010_v56 }
 0x462   : > { %v5015_v47 = vpop.eup %5014  ;;  %v2584_v32 = vmul.f32 %v5013_v25, %v5999_v12 }
 0x463   : > { %v2457_v6 = vpop.xlane.xlu1 %2456  ;;  %v2583_v9 = vmul.f32 %v5015_v47, %v6015_v8 }
 0x464   : > { %5020 = vrcp.f32 %v2457_v6  ;;  %v2623_v24 = vpack.c.bf16 %v2585_v7, %v2584_v32 }
 0x465   : > { %v2448_v60 = vpop.xlane.xlu0 %2447  ;;  %v2622_v37 = vpack.c.bf16 %v2583_v9, %v2582_v31 }
 0x466   : > { %5022 = vrcp.f32 %v2448_v60 }
 0x467   : > { %5024 = vrcp.f32 %v2454_v48  ;;  %v2451_v15 = vpop.xlane.xlu1 %2450  ;;  %4656 = vmatprep.mubr.msk.bf16.mxu1 %vm298_vm0, %v2622_v37 }
 0x468   : > { %v5017_v18 = vpop.eup %5016  ;;  %5026 = vrcp.f32 %v2451_v15  ;;  %4657 = vmatmul.mubr.msk.bf16.vlgmr.msra.gmra.mrb[56].mxu1 %vm298_vm0, %v2623_v24 }
 0x469   : > { %4667 = vmatpush3.bf16.xpose.msra.mxu1 %v3449_v41  ;;  %v2466_v56 = vpop.xlane.xlu0 %2465  ;;  %v2594_v21 = vmul.f32 %v5017_v18, %v6022_v22 }
 0x46a   : > { %v5019_v8 = vpop.eup %5018  ;;  %5028 = vrcp.f32 %v2466_v56 }
 0x46b   : > { %v2469_v12 = vpop.xlane.xlu1 %2468  ;;  %v2595_v45 = vmul.f32 %v5019_v8, %v6026_v23 }
 0x46c   : > { %5030 = vrcp.f32 %v2469_v12 }
 0x46d   : > { %v2628_v17 = vpack.c.bf16 %v2595_v45, %v2594_v21 }
 0x46e   : > { %v5021_v30 = vpop.eup %5020 }
 0x46f   : > { %4674 = vmatprep.mubr.msk.bf16.mxu0 %vm298_vm0, %v2628_v17  ;;  %v2593_v13 = vmul.f32 %v5021_v30, %v6034_v38 }
 0x470   : > { %v5023_v63 = vpop.eup %5022 }
 0x471   : > { %v5025_v61 = vpop.eup %5024  ;;  %v2590_v28 = vmul.f32 %v5023_v63, %v6439_v40 }
 0x472   : > { %v5027_v52 = vpop.eup %5026  ;;  %v2592_v36 = vmul.f32 %v5025_v61, %v6441_v1 }
 0x473   : > { %v2591_v44 = vmul.f32 %v5027_v52, %v6440_v27 }
 0x474   : > { %v5029_v3 = vpop.eup %5028  ;;  %v2627_v23 = vpack.c.bf16 %v2593_v13, %v2592_v36 }
 0x475   : > { %v2626_v22 = vpack.c.bf16 %v2591_v44, %v2590_v28  ;;  %v2596_v42 = vmul.f32 %v5029_v3, %v6442_v5 }
 0x476   : > { %v5031_v46 = vpop.eup %5030 }
 0x477   : > { %v2597_v39 = vmul.f32 %v5031_v46, %v6443_v59  ;;  %4668 = vmatprep.mubr.msk.bf16.mxu1 %vm298_vm0, %v2626_v22 }
 0x478   : > { %4669 = vmatmul.mubr.msk.bf16.vlgmr.msra.gmra.mrb[60].mxu1 %vm298_vm0, %v2627_v23 }
 0x479   : > { %v2629_v20 = vpack.c.bf16 %v2597_v39, %v2596_v42 }
 0x47b   : > { %4675 = vmatmul.mubr.msk.bf16.vlgmr.msra.gmra.mrb[76].mxu0 %vm298_vm0, %v2629_v20 }
 0x4ba   : > { %v4586_v38 = vpop.f32.mrb[32].mxu1 }
 0x4bb   : > { %v2673_v58 = vpop.f32.mrb[33].mxu1 }
 0x4bc   : > { %v4587_v54 = vpop.f32.mrb[34].mxu1 }
 0x4bd   : > { %v3559_v57 = vpack.c.bf16 %v4587_v54, %v4586_v38  ;;  %v2676_v16 = vpop.f32.mrb[35].mxu1 }
 0x4be   : > { %v3558_v55 = vpack.c.bf16 %v2676_v16, %v2673_v58 }
 0x4c0   : > { %3590 = vxpose.xlu0.c.b16.start [1/2] (short) (narrow) %v3558_v55, 16 }
 0x4c2   : > { %v4598_v49 = vpop.f32.mrb[36].mxu1 }
 0x4c3   : > { %v2789_v43 = vpop.f32.mrb[37].mxu1 }
 0x4c4   : > { %3591 = vxpose.xlu0.c.b16.end [2/2] (short) (narrow) %v3559_v57, 16  ;;  %v4599_v14 = vpop.f32.mrb[38].mxu1 }
 0x4c5   : > { %v3563_v2 = vpack.c.bf16 %v4599_v14, %v4598_v49  ;;  %v2792_v33 = vpop.f32.mrb[39].mxu1 }
 0x4c6   : > { %v3562_v29 = vpack.c.bf16 %v2792_v33, %v2789_v43 }
 0x4c8   : > { %3622 = vxpose.xlu0.c.b16.start [1/2] (short) (narrow) %v3562_v29, 16 }
 0x4ca   : > { %v4592_v62 = vpop.f32.mrb[48].mxu0 }
 0x4cb   : > { %v2731_v10 = vpop.f32.mrb[49].mxu0 }
 0x4cc   : > { %3623 = vxpose.xlu0.c.b16.end [2/2] (short) (narrow) %v3563_v2, 16  ;;  %v4593_v35 = vpop.f32.mrb[50].mxu0 }
 0x4cd   : > { %v3561_v50 = vpack.c.bf16 %v4593_v35, %v4592_v62  ;;  %v2734_v53 = vpop.f32.mrb[51].mxu0 }
 0x4ce   : > { %v3560_v34 = vpack.c.bf16 %v2734_v53, %v2731_v10 }
 0x4d0   : > { %3606 = vxpose.xlu1.c.b16.start [1/2] (short) (narrow) %v3560_v34, 16  ;;  %v4774_v34 = vld [vmem:[%s6316_s4] sm:$0xff]  }
 0x4d1   : > { %4678 = vmatprep.subr.bf16.mxu1 %v4774_v34 }
 0x4d2   : > { %4679 = vmatpush3.bf16.msra.mxu1 %v4774_v34 }
 0x4d4   : > { %3607 = vxpose.xlu1.c.b16.end [2/2] (short) (narrow) %v3561_v50, 16 }
 0x4e2   : > { %v4604_v4 = vpop.f32.mrb[52].mxu0 }
 0x4e3   : > { %v2847_v19 = vpop.f32.mrb[53].mxu0 }
 0x4e4   : > { %v4605_v26 = vpop.f32.mrb[54].mxu0 }
 0x4e5   : > { %v3565_v11 = vpack.c.bf16 %v4605_v26, %v4604_v4  ;;  %v2850_v51 = vpop.f32.mrb[55].mxu0 }
 0x4e6   : > { %v3564_v0 = vpack.c.bf16 %v2850_v51, %v2847_v19 }
 0x4e8   : > { %3638 = vxpose.xlu1.c.b16.start [1/2] (short) (narrow) %v3564_v0, 16 }
 0x4ea   : > { %v4616_v25 = vpop.f32.mrb[56].mxu0 }
 0x4eb   : > { %v2963_v48 = vpop.f32.mrb[57].mxu0 }
 0x4ec   : > { %3639 = vxpose.xlu1.c.b16.end [2/2] (short) (narrow) %v3565_v11, 16  ;;  %v4617_v47 = vpop.f32.mrb[58].mxu0  ;;  %v4775_v11 = vld [vmem:[%s6316_s4 + $0x8] sm:$0xff]  }
 0x4ed   : > { %v3569_v7 = vpack.c.bf16 %v4617_v47, %v4616_v25  ;;  %v2966_v6 = vpop.f32.mrb[59].mxu0  ;;  %4680 = vmatprep.subr.bf16.mxu1 %v4775_v11 }
 0x4ee   : > { %v3568_v31 = vpack.c.bf16 %v2966_v6, %v2963_v48  ;;  %4681 = vmatpush3.bf16.msra.mxu1 %v4775_v11 }
 0x4f0   : > { %3670 = vxpose.xlu1.c.b16.start [1/2] (short) (narrow) %v3568_v31, 16 }
 0x4f2   : > { %v4610_v9 = vpop.f32.mrb[40].mxu1 }
 0x4f3   : > { %v2905_v32 = vpop.f32.mrb[41].mxu1 }
 0x4f4   : > { %3671 = vxpose.xlu1.c.b16.end [2/2] (short) (narrow) %v3569_v7, 16  ;;  %v4611_v60 = vpop.f32.mrb[42].mxu1 }
 0x4f5   : > { %v3567_v37 = vpack.c.bf16 %v4611_v60, %v4610_v9  ;;  %v2908_v24 = vpop.f32.mrb[43].mxu1 }
 0x4f6   : > { %v3566_v15 = vpack.c.bf16 %v2908_v24, %v2905_v32 }
 0x4f8   : > { %3654 = vxpose.xlu0.c.b16.start [1/2] (short) (narrow) %v3566_v15, 16 }
 0x4fa   : > { %v4628_v18 = vpop.f32.mrb[60].mxu0 }
 0x4fb   : > { %v3079_v41 = vpop.f32.mrb[61].mxu0 }
 0x4fc   : > { %3655 = vxpose.xlu0.c.b16.end [2/2] (short) (narrow) %v3567_v37, 16  ;;  %v4629_v56 = vpop.f32.mrb[62].mxu0 }
 0x4fd   : > { %v3573_v8 = vpack.c.bf16 %v4629_v56, %v4628_v18  ;;  %v3082_v12 = vpop.f32.mrb[63].mxu0 }
 0x4fe   : > { %v3572_v21 = vpack.c.bf16 %v3082_v12, %v3079_v41 }
 0x500   : > { %3702 = vxpose.xlu1.c.b16.start [1/2] (short) (narrow) %v3572_v21, 16 }
 0x502   : > { %v4622_v45 = vpop.f32.mrb[44].mxu1 }
 0x503   : > { %v3021_v17 = vpop.f32.mrb[45].mxu1 }
 0x504   : > { %3703 = vxpose.xlu1.c.b16.end [2/2] (short) (narrow) %v3573_v8, 16  ;;  %v4623_v30 = vpop.f32.mrb[46].mxu1 }
 0x505   : > { %v3571_v63 = vpack.c.bf16 %v4623_v30, %v4622_v45  ;;  %v3024_v61 = vpop.f32.mrb[47].mxu1 }
 0x506   : > { %v3570_v52 = vpack.c.bf16 %v3024_v61, %v3021_v17 }
 0x508   : > { %3686 = vxpose.xlu0.c.b16.start [1/2] (short) (narrow) %v3570_v52, 16 }
 0x50a   : > { %v4640_v13 = vpop.f32.mrb[64].mxu0 }
 0x50b   : > { %v3195_v40 = vpop.f32.mrb[65].mxu0 }
 0x50c   : > { %3687 = vxpose.xlu0.c.b16.end [2/2] (short) (narrow) %v3571_v63, 16  ;;  %v4641_v28 = vpop.f32.mrb[66].mxu0 }
 0x50d   : > { %v3577_v27 = vpack.c.bf16 %v4641_v28, %v4640_v13  ;;  %v3198_v44 = vpop.f32.mrb[67].mxu0 }
 0x50e   : > { %v3576_v3 = vpack.c.bf16 %v3198_v44, %v3195_v40 }
 0x510   : > { %3734 = vxpose.xlu1.c.b16.start [1/2] (short) (narrow) %v3576_v3, 16 }
 0x512   : > { %v4634_v1 = vpop.f32.mrb[48].mxu1 }
 0x513   : > { %v3137_v36 = vpop.f32.mrb[49].mxu1 }
 0x514   : > { %3735 = vxpose.xlu1.c.b16.end [2/2] (short) (narrow) %v3577_v27, 16  ;;  %v4635_v22 = vpop.f32.mrb[50].mxu1 }
 0x515   : > { %v3575_v46 = vpack.c.bf16 %v4635_v22, %v4634_v1  ;;  %v3140_v23 = vpop.f32.mrb[51].mxu1 }
 0x516   : > { %v3574_v5 = vpack.c.bf16 %v3140_v23, %v3137_v36 }
 0x518   : > { %3718 = vxpose.xlu0.c.b16.start [1/2] (short) (narrow) %v3574_v5, 16 }
 0x51a   : > { %v4652_v42 = vpop.f32.mrb[68].mxu0 }
 0x51b   : > { %v3311_v59 = vpop.f32.mrb[69].mxu0 }
 0x51c   : > { %3719 = vxpose.xlu0.c.b16.end [2/2] (short) (narrow) %v3575_v46, 16  ;;  %v4653_v39 = vpop.f32.mrb[70].mxu0 }
 0x51d   : > { %v3581_v20 = vpack.c.bf16 %v4653_v39, %v4652_v42  ;;  %v3314_v38 = vpop.f32.mrb[71].mxu0 }
 0x51e   : > { %v3580_v58 = vpack.c.bf16 %v3314_v38, %v3311_v59 }
 0x520   : > { %3766 = vxpose.xlu1.c.b16.start [1/2] (short) (narrow) %v3580_v58, 16 }
 0x522   : > { %v4646_v54 = vpop.f32.mrb[52].mxu1 }
 0x523   : > { %v3253_v57 = vpop.f32.mrb[53].mxu1 }
 0x524   : > { %3767 = vxpose.xlu1.c.b16.end [2/2] (short) (narrow) %v3581_v20, 16  ;;  %v4647_v16 = vpop.f32.mrb[54].mxu1 }
 0x525   : > { %v3579_v55 = vpack.c.bf16 %v4647_v16, %v4646_v54  ;;  %v3256_v49 = vpop.f32.mrb[55].mxu1  ;;  %v4332_v54 = vld [vmem:[%s6317_s5] ss:$0 sm:$0xff] }
 0x526   : > { %v3578_v43 = vpack.c.bf16 %v3256_v49, %v3253_v57  ;;  %v3598_v9 = vpop.trf.xlu0 }
 0x528   : > { %3750 = vxpose.xlu0.c.b16.start [1/2] (short) (narrow) %v3578_v43, 16 }
 0x52c   : > { %3751 = vxpose.xlu0.c.b16.end [2/2] (short) (narrow) %v3579_v55, 16 }
 0x52e   : > { %v3630_v56 = vpop.trf.xlu0 }
 0x533   : > { %v4664_v14 = vpop.f32.mrb[72].mxu0 }
 0x534   : > { %v3427_v2 = vpop.f32.mrb[73].mxu0 }
 0x535   : > { %v4665_v33 = vpop.f32.mrb[74].mxu0 }
 0x536   : > { %v3585_v29 = vpack.c.bf16 %v4665_v33, %v4664_v14  ;;  %v3430_v62 = vpop.f32.mrb[75].mxu0  ;;  %v3614_v60 = vpop.trf.xlu1 }
 0x537   : > { %v3584_v10 = vpack.c.bf16 %v3430_v62, %v3427_v2  ;;  %v4324_v18 = vcombine.low %v3598_v9, %v3614_v60 }
 0x539   : > { %3798 = vxpose.xlu1.c.b16.start [1/2] (short) (narrow) %v3584_v10, 16 }
 0x53b   : > { %v4658_v35 = vpop.f32.mrb[56].mxu1 }
 0x53c   : > { %v3369_v50 = vpop.f32.mrb[57].mxu1 }
 0x53d   : > { %3799 = vxpose.xlu1.c.b16.end [2/2] (short) (narrow) %v3585_v29, 16  ;;  %v4659_v53 = vpop.f32.mrb[58].mxu1 }
 0x53e   : > { %v3583_v4 = vpack.c.bf16 %v4659_v53, %v4658_v35  ;;  %v3372_v19 = vpop.f32.mrb[59].mxu1 }
 0x53f   : > { %v3582_v26 = vpack.c.bf16 %v3372_v19, %v3369_v50 }
 0x541   : > { %3782 = vxpose.xlu0.c.b16.start [1/2] (short) (narrow) %v3582_v26, 16 }
 0x545   : > { %3783 = vxpose.xlu0.c.b16.end [2/2] (short) (narrow) %v3583_v4, 16 }
 0x54b   : > { %v4670_v51 = vpop.f32.mrb[60].mxu1 }
 0x54c   : > { %v3485_v0 = vpop.f32.mrb[61].mxu1 }
 0x54d   : > { %v4671_v25 = vpop.f32.mrb[62].mxu1 }
 0x54e   : > { %v3587_v48 = vpack.c.bf16 %v4671_v25, %v4670_v51  ;;  %v3488_v47 = vpop.f32.mrb[63].mxu1  ;;  %v4676_v7 = vpop.f32.mrb[76].mxu0 }
 0x54f   : > { %v3586_v6 = vpack.c.bf16 %v3488_v47, %v3485_v0  ;;  %v3543_v31 = vpop.f32.mrb[77].mxu0  ;;  %v3646_v41 = vpop.trf.xlu1 }
 0x550   : > { %v4677_v32 = vpop.f32.mrb[78].mxu0  ;;  %v4325_v8 = vcombine.low %v3630_v56, %v3646_v41 }
 0x551   : > { %v3589_v37 = vpack.c.bf16 %v4677_v32, %v4676_v7  ;;  %3814 = vxpose.xlu0.c.b16.start [1/2] (short) (narrow) %v3586_v6, 16  ;;  %v3546_v24 = vpop.f32.mrb[79].mxu0 }
 0x552   : > { %v3588_v15 = vpack.c.bf16 %v3546_v24, %v3543_v31 }
 0x554   : > { %3830 = vxpose.xlu1.c.b16.start [1/2] (short) (narrow) %v3588_v15, 16 }
 0x555   : > { %3815 = vxpose.xlu0.c.b16.end [2/2] (short) (narrow) %v3587_v48, 16 }
 0x556   : > { %v3678_v12 = vpop.trf.xlu1 }
 0x558   : > { %3831 = vxpose.xlu1.c.b16.end [2/2] (short) (narrow) %v3589_v37, 16 }
 0x559   : > { %3894 = vxpose.xlu0.c.b16.start [1/2] (short) (narrow) %v4324_v18, 32 }
 0x55d   : > { %3895 = vxpose.xlu0.c.b16.end [2/2] (short) (narrow) %v4325_v8, 32 }
 0x55e   : > { %v3662_v21 = vpop.trf.xlu0 }
 0x55f   : > { %v4326_v45 = vcombine.low %v3662_v21, %v3678_v12 }
 0x561   : > { %3910 = vxpose.xlu1.c.b16.start [1/2] (short) (narrow) %v4326_v45, 32 }
 0x566   : > { %v3710_v17 = vpop.trf.xlu1 }
 0x56e   : > { %v3694_v30 = vpop.trf.xlu0 }
 0x56f   : > { %v4327_v63 = vcombine.low %v3694_v30, %v3710_v17 }
 0x571   : > { %3911 = vxpose.xlu1.c.b16.end [2/2] (short) (narrow) %v4327_v63, 32 }
 0x576   : > { %v3742_v61 = vpop.trf.xlu1 }
 0x57e   : > { %v3726_v52 = vpop.trf.xlu0 }
 0x57f   : > { %v4328_v13 = vcombine.low %v3726_v52, %v3742_v61 }
 0x581   : > { %3926 = vxpose.xlu0.c.b16.start [1/2] (short) (narrow) %v4328_v13, 32 }
 0x586   : > { %v3774_v40 = vpop.trf.xlu1 }
 0x58e   : > { %v3758_v28 = vpop.trf.xlu0 }
 0x58f   : > { %v4329_v27 = vcombine.low %v3758_v28, %v3774_v40 }
 0x591   : > { %3927 = vxpose.xlu0.c.b16.end [2/2] (short) (narrow) %v4329_v27, 32 }
 0x59f   : > { %v3806_v44 = vpop.trf.xlu1 }
 0x5a7   : > { %v3790_v3 = vpop.trf.xlu0 }
 0x5a8   : > { %v4330_v1 = vcombine.low %v3790_v3, %v3806_v44 }
 0x5aa   : > { %3942 = vxpose.xlu1.c.b16.start [1/2] (short) (narrow) %v4330_v1, 32 }
 0x5b7   : > { %v3822_v36 = vpop.trf.xlu0 }
 0x5ba   : > { %v3838_v22 = vpop.trf.xlu1 }
 0x5bb   : > { %v4331_v46 = vcombine.low %v3822_v36, %v3838_v22 }
 0x5bd   : > { %3943 = vxpose.xlu1.c.b16.end [2/2] (short) (narrow) %v4331_v46, 32 }
 0x5bf   : > { %v3902_v23 = vpop.trf.xlu0 }
 0x5c0   : > { %4682 = vmatprep.mubr.msk.bf16.mxu1 %vm298_vm0, %v3902_v23 }
 0x5c3   : > { %v3903_v5 = vpop.trf.xlu0 }
 0x5c4   : > { %4683 = vmatmul.mubr.msk.bf16.vlgmr.msra.gmra.mrb[64].mxu1 %vm298_vm0, %v3903_v5 }
 0x5d3   : > { %v3918_v42 = vpop.trf.xlu1 }
 0x5d4   : > { %4686 = vmatprep.mubr.msk.bf16.mxu1 %vm298_vm0, %v3918_v42 }
 0x5d7   : > { %v3919_v59 = vpop.trf.xlu1 }
 0x5d8   : > { %4687 = vmatmul.mubr.msk.bf16.gmra.mrb[68].mxu1 %vm298_vm0, %v3919_v59 }
 0x5f3   : > { %v3934_v39 = vpop.trf.xlu0 }
 0x5f4   : > { %4690 = vmatprep.mubr.msk.bf16.mxu1 %vm298_vm0, %v3934_v39 }
 0x5f7   : > { %v3935_v20 = vpop.trf.xlu0 }
 0x5f8   : > { %4691 = vmatmul.mubr.msk.bf16.gmra.mrb[72].mxu1 %vm298_vm0, %v3935_v20 }
 0x61f   : > { %v3950_v38 = vpop.trf.xlu1 }
 0x620   : > { %4694 = vmatprep.mubr.msk.bf16.mxu1 %vm298_vm0, %v3950_v38 }
 0x623   : > { %v3951_v58 = vpop.trf.xlu1 }
 0x624   : > { %4695 = vmatmul.mubr.msk.bf16.gmra.mrb[76].mxu1 %vm298_vm0, %v3951_v58 }
 0x697   : > { %v4684_v57 = vpop.f32.mrb[64].mxu1 }
 0x698   : > { %v4048_v16 = vadd.f32 %v4684_v57, %v4332_v54  ;;  %v4039_v55 = vpop.f32.mrb[65].mxu1 }
 0x699   : > { %v4040_v49 = vadd.f32 %v4332_v54, %v4039_v55  ;;  %v4685_v43 = vpop.f32.mrb[66].mxu1 }
 0x69a   : > { %4104 = vst.msk [vmem:[%s6226_s15 + $0x10] sm:$0xff] %vm298_vm0, %v4048_v16  ;;  %v4051_v14 = vadd.f32 %v4685_v43, %v4332_v54  ;;  %v4042_v2 = vpop.f32.mrb[67].mxu1 }
 0x69b   : > { %4102 = vst.msk [vmem:[%s6226_s15] sm:$0xff] %vm298_vm0, %v4040_v49  ;;  %v4043_v33 = vadd.f32 %v4332_v54, %v4042_v2 }
 0x69c   : > { %4105 = vst.msk [vmem:[%s6226_s15 + $0x18] sm:$0xff] %vm298_vm0, %v4051_v14 }
 0x69d   : > { %4103 = vst.msk [vmem:[%s6226_s15 + $0x8] sm:$0xff] %vm298_vm0, %v4043_v33 }
 0x6ab   : > { %v4688_v29 = vpop.f32.mrb[68].mxu1 }
 0x6ac   : > { %v4064_v62 = vadd.f32 %v4688_v29, %v4332_v54  ;;  %v4055_v10 = vpop.f32.mrb[69].mxu1 }
 0x6ad   : > { %v4056_v35 = vadd.f32 %v4332_v54, %v4055_v10  ;;  %v4689_v50 = vpop.f32.mrb[70].mxu1 }
 0x6ae   : > { %4108 = vst.msk [vmem:[%s6226_s15 + $0x30] sm:$0xff] %vm298_vm0, %v4064_v62  ;;  %v4067_v53 = vadd.f32 %v4689_v50, %v4332_v54  ;;  %v4058_v34 = vpop.f32.mrb[71].mxu1 }
 0x6af   : > { %4106 = vst.msk [vmem:[%s6226_s15 + $0x20] sm:$0xff] %vm298_vm0, %v4056_v35  ;;  %v4059_v4 = vadd.f32 %v4332_v54, %v4058_v34 }
 0x6b0   : > { %4109 = vst.msk [vmem:[%s6226_s15 + $0x38] sm:$0xff] %vm298_vm0, %v4067_v53 }
 0x6b1   : > { %4107 = vst.msk [vmem:[%s6226_s15 + $0x28] sm:$0xff] %vm298_vm0, %v4059_v4 }
 0x6cb   : > { %v4692_v19 = vpop.f32.mrb[72].mxu1 }
 0x6cc   : > { %v4080_v26 = vadd.f32 %v4692_v19, %v4332_v54  ;;  %v4071_v11 = vpop.f32.mrb[73].mxu1 }
 0x6cd   : > { %v4072_v51 = vadd.f32 %v4332_v54, %v4071_v11  ;;  %v4693_v0 = vpop.f32.mrb[74].mxu1 }
 0x6ce   : > { %4112 = vst.msk [vmem:[%s6226_s15 + $0x50] sm:$0xff] %vm298_vm0, %v4080_v26  ;;  %v4083_v25 = vadd.f32 %v4693_v0, %v4332_v54  ;;  %v4074_v48 = vpop.f32.mrb[75].mxu1 }
 0x6cf   : > { %4110 = vst.msk [vmem:[%s6226_s15 + $0x40] sm:$0xff] %vm298_vm0, %v4072_v51  ;;  %v4075_v47 = vadd.f32 %v4332_v54, %v4074_v48 }
 0x6d0   : > { %4113 = vst.msk [vmem:[%s6226_s15 + $0x58] sm:$0xff] %vm298_vm0, %v4083_v25 }
 0x6d1   : > { %4111 = vst.msk [vmem:[%s6226_s15 + $0x48] sm:$0xff] %vm298_vm0, %v4075_v47 }
 0x6f7   : > { %v4696_v7 = vpop.f32.mrb[76].mxu1 }
 0x6f8   : > { %v4096_v6 = vadd.f32 %v4696_v7, %v4332_v54  ;;  %v4087_v31 = vpop.f32.mrb[77].mxu1 }
 0x6f9   : > { %v4088_v9 = vadd.f32 %v4332_v54, %v4087_v31  ;;  %v4697_v32 = vpop.f32.mrb[78].mxu1 }
 0x6fa   : > { %4116 = vst.msk [vmem:[%s6226_s15 + $0x70] sm:$0xff] %vm298_vm0, %v4096_v6  ;;  %v4099_v60 = vadd.f32 %v4697_v32, %v4332_v54  ;;  %v4090_v37 = vpop.f32.mrb[79].mxu1 }
 0x6fb   : > { %4114 = vst.msk [vmem:[%s6226_s15 + $0x60] sm:$0xff] %vm298_vm0, %v4088_v9  ;;  %v4091_v24 = vadd.f32 %v4332_v54, %v4090_v37 }
 0x6fc   : > { %4117 = vst.msk [vmem:[%s6226_s15 + $0x78] sm:$0xff] %vm298_vm0, %v4099_v60 }
 0x6fd   : > { %4115 = vst.msk [vmem:[%s6226_s15 + $0x68] sm:$0xff] %vm298_vm0, %v4091_v24 }
 0x6fe   : > { %5045 = shalt.err (!%p5042_p3)
}
 0x6ff   : > { %s5046_s10 = scalar_lea.hbm %s6259_s20, 2048  ;;  %s5050_s13 = scalar_lea.hbm %s6318_s6, 4096 }
 0x700   : > { %p5047_p4 = scmp.ne.s32.totalorder %s6259_s20, %s5046_s10  ;;  %p5051_p9 = scmp.lt.u32.totalorder %s6259_s20, %s6318_s6 }
 0x701   : > { %p5052_p10 = scmp.lt.u32.totalorder %s5050_s13, %s5046_s10  ;;  %p5054_p12 = scmp.lt.u32.totalorder %s5046_s10, %s6259_s20 }
 0x702   : > { %p5048_p7 = pnand %p5047_p4, %p5172_p5 }
 0x703   : > { %p5053_p11 = por %p5052_p10, %p5051_p9 }
 0x704   : > { %p5049_p8 = pneg %p5048_p7 }
 0x705   : > { %p5055_p13 = por %p5054_p12, %p5053_p11 }
 0x707   : > { %p5056_p0 = pnand %p5055_p13, %p5049_p8 }
 0x709   : > { %5059 = shalt.err (!%p5056_p0)
}
 0x70a   : > { %s5097_s16 = smov 128   ;;  %s5098_s18 = smov 8  }
 0x70b   : > { %4730 = dma.vmem_to_hbm [thread:$0]  (%p5172_p5), %s6261_s17, 2048, %s6259_s20, %s6271_s25, %s5097_s16, %s5097_s16, %s5098_s18  }
 0x70c PF: > { %p4736_p1 = scmp.ge.s32.totalorder %s5094_s24, 2  ;;  %s4147_s19 = sand.u32 1, %s5082_s21  }
 0x70d   : > { %s4148_s26 = scalar_lea.sflag [#allocation3], %s4147_s19 }
 0x70e   : > { %p4733_p2 = pnand %p4736_p1, %p5176_p6 }
 0x710   : > { %5077 = dma.done.wait (!%p4733_p2), %s4148_s26, 2048  }
 0x711   : > { %5079 = vsyncadd (!%p4733_p2), %s4148_s26, 4294965248  ;;  %p16_p3 = scmp.ge.s32.totalorder %s5159_s27, 4   ;;  %s6444_s21 = smov %s5086_s22 }
 0x712   : > { %s6445_s22 = smov %s5090_s23  ;;  %s6446_s23 = smov %s5170_s30 }
 0x713   : > { %s6447_s24 = smov %s5159_s27  ;;  %18 = sbr.rel (!%p16_p3) target bundleno = 3 (0x3), region = 79 }
 0x71a   :  { %4153 = vsyncpa [#allocation3], 1 }
 0x71b   :  { %4155 = vsyncpa [#allocation3 + $0x1], 1 }

</bundles_post_ra>
